<compile_context>
chip_gen: v7x
topology: tpu7x:2x2x1
jax: 0.10.0
libtpu: 0.0.40
codegen_flags: <defaults>
</compile_context>

<pallas_src>
import functools
import math

import jax
import jax.numpy as jnp
from jax.experimental import pallas as pl
from jax.experimental.pallas import tpu as pltpu


# ---------------------------------------------------------------------------
# Fused encoder-layer kernel
# ---------------------------------------------------------------------------
def _encoder_layer_kernel(x_ref, mask_ref,
                          wqkv_ref, bqkv_ref, wo_ref, vec_ref,
                          w1_ref, b1_ref, w2_ref,
                          o_ref, ctx_ref, *, heads):
    bt, S, D = x_ref.shape
    dk = D // heads
    scale = 1.0 / math.sqrt(dk)
    f32, bf16 = jnp.float32, jnp.bfloat16

    x = x_ref[...].reshape(bt * S, D)          # (M, D) f32, M = bt*S
    xb = x.astype(bf16)

    # Fused QKV projection: one MXU pass with N = 3*D.
    qkv = jnp.dot(xb, wqkv_ref[...], preferred_element_type=f32) + bqkv_ref[...]
    # Fold 1/sqrt(dk) into q once; cast q/k/v to bf16 once (not per head).
    q16 = (qkv[:, :D] * scale).astype(bf16)
    k16 = qkv[:, D:2 * D].astype(bf16)
    v16 = qkv[:, 2 * D:].astype(bf16)

    # Per-(batch-row, head) masked softmax attention.  Context is written to a
    # preallocated VMEM scratch at static offsets (no list build / concat).
    for b in range(bt):
        # Additive key mask: 0 where token > 0, -1e9 elsewhere.  Shape (1, S).
        kbias = jnp.where(mask_ref[b] > 0.0, 0.0, -1e9)
        rows = slice(b * S, (b + 1) * S)
        for h in range(heads):
            cols = slice(h * dk, (h + 1) * dk)
            qh = q16[rows, cols]
            kh = k16[rows, cols]
            vh = v16[rows, cols]
            # scores = qh @ kh^T (contract dk of both; no explicit transpose)
            scores = jax.lax.dot_general(
                qh, kh, (((1,), (1,)), ((), ())),
                preferred_element_type=f32) + kbias
            m = jnp.max(scores, axis=-1, keepdims=True)
            p = jnp.exp(scores - m)
            l = jnp.sum(p, axis=-1, keepdims=True)
            probs = p * pl.reciprocal(l, approx=True)
            ctx_ref[rows, cols] = jnp.dot(
                probs.astype(bf16), vh, preferred_element_type=f32)

    context = ctx_ref[...]                     # (M, D) f32
    attn = jnp.dot(context.astype(bf16), wo_ref[...],
                   preferred_element_type=f32) + vec_ref[0:1]

    gamma = vec_ref[1:2]
    beta = vec_ref[2:3]

    def layer_norm(y):   # the torch module reuses ONE LayerNorm within a layer
        mu = jnp.mean(y, axis=-1, keepdims=True)
        mu2 = jnp.mean(y * y, axis=-1, keepdims=True)   # single-pass variance
        var = mu2 - mu * mu
        return (y - mu) * jax.lax.rsqrt(var + 1e-5) * gamma + beta

    h1 = layer_norm(attn + x)

    f = jnp.dot(h1.astype(bf16), w1_ref[...],
                preferred_element_type=f32) + b1_ref[...]
    # TODO(synk): torch.nn.GELU() is erf-exact; tanh approximation used here
    # (erf has no guaranteed Mosaic lowering); max abs deviation ~1e-3.
    g = jax.nn.gelu(f, approximate=True)
    ffn = jnp.dot(g.astype(bf16), w2_ref[...],
                  preferred_element_type=f32) + vec_ref[3:4]

    o_ref[...] = layer_norm(ffn + h1).reshape(bt, S, D).astype(o_ref.dtype)


# ---------------------------------------------------------------------------
# VMEM budgeting helpers (generation-adaptive)
# ---------------------------------------------------------------------------
@functools.lru_cache(maxsize=1)
def _vmem_limit_bytes():
    cap = 128 << 20
    try:
        info = pltpu.get_tpu_info()
        cap = int(getattr(info, "vmem_capacity_bytes", cap) or cap)
    except Exception:
        pass
    # Leave headroom; ~100 MiB on v5e/v6e (128 MiB VMEM), ~48 MiB on v7x (64 MiB).
    return int(min(cap - (16 << 20), 100 << 20))


def _pick_batch_tile(B, S, D, F, vmem_limit):
    """Largest divisor of B (<= 8) whose activations fit next to the weights."""
    if S % 8 != 0:
        return 1   # keep the (Bt,S,D)->(Bt*S,D) collapse layout-trivial
    weight_bytes = (4 * D * D + 2 * D * F) * 2          # resident bf16 weights
    per_row = 4 * S * (9 * D + 2 * F)                   # rough live f32 bytes / batch row
    budget = vmem_limit - 2 * weight_bytes - (4 << 20)
    cap = max(1, budget // max(per_row, 1))
    cap = min(cap, 8)
    bt = 1
    for cand in range(1, B + 1):
        if B % cand == 0 and cand <= cap:
            bt = cand
    return bt


# ---------------------------------------------------------------------------
# Encoder-layer wrapper
# ---------------------------------------------------------------------------
def encoder_layer(x, key_mask, lp, *, heads):
    B, S, D = x.shape
    F = lp["w1"].shape[1]

    vmem_limit = _vmem_limit_bytes()
    bt = _pick_batch_tile(B, S, D, F, vmem_limit)
    weight_bytes = (4 * D * D + 2 * D * F) * 2
    # On small-VMEM parts (v7x) single-buffer the constant-index weight blocks:
    # they are never re-fetched, so Buffered(1) is safe and reclaims VMEM.
    single_buf = (2 * weight_bytes) > (vmem_limit // 2)

    def resident(shape):
        idx = lambda b, _n=len(shape): (0,) * _n
        if single_buf:
            return pl.BlockSpec(shape, idx, pipeline_mode=pl.Buffered(1))
        return pl.BlockSpec(shape, idx)

    flops = B * (6 * S * D * D + 4 * S * S * D + 2 * S * D * D + 4 * S * D * F)
    transcendentals = B * (heads * S * S + S * F)
    bytes_accessed = (2 * B * S * D * 4 + B * S * 4
                      + (4 * D * D + 2 * D * F) * 2     # bf16 weights
                      + (7 * D + F) * 4)                # biases + layernorm

    kernel = functools.partial(_encoder_layer_kernel, heads=heads)
    return pl.pallas_call(
        kernel,
        out_shape=jax.ShapeDtypeStruct((B, S, D), jnp.float32),
        grid_spec=pltpu.PrefetchScalarGridSpec(
            num_scalar_prefetch=0,
            grid=(B // bt,),
            in_specs=[
                pl.BlockSpec((bt, S, D), lambda b: (b, 0, 0)),   # x
                pl.BlockSpec((bt, 1, S), lambda b: (b, 0, 0)),   # key mask
                resident((D, 3 * D)),                            # wqkv (bf16)
                resident((1, 3 * D)),                            # bqkv
                resident((D, D)),                                # wo (bf16)
                resident((4, D)),                                # [bo; ln_g; ln_b; b2]
                resident((D, F)),                                # w1 (bf16)
                resident((1, F)),                                # b1
                resident((F, D)),                                # w2 (bf16)
            ],
            out_specs=pl.BlockSpec((bt, S, D), lambda b: (b, 0, 0)),
            scratch_shapes=[pltpu.VMEM((bt * S, D), jnp.float32)],
        ),
        compiler_params=pltpu.CompilerParams(
            dimension_semantics=("parallel",),
            vmem_limit_bytes=vmem_limit,
        ),
        cost_estimate=pl.CostEstimate(
            flops=flops, transcendentals=transcendentals,
            bytes_accessed=bytes_accessed),
    )(x, key_mask,
      lp["wqkv"], lp["bqkv"], lp["wo"], lp["vecs"],
      lp["w1"], lp["b1"], lp["w2"])


# ---------------------------------------------------------------------------
# Embeddings, forward pass, reference
# ---------------------------------------------------------------------------
def positional_embedding(seq_len, d_model):
    # Mirrors the torch loop: even column c -> sin(pos / 10000**(2c/d)),
    # odd column c -> cos(pos / 10000**(2c/d)).
    pos = jnp.arange(seq_len, dtype=jnp.float32)[:, None]
    col = jnp.arange(d_model, dtype=jnp.float32)[None, :]
    angle = pos / jnp.power(10000.0, 2.0 * col / d_model)
    even = (jnp.arange(d_model) % 2 == 0)[None, :]
    return jnp.where(even, jnp.sin(angle), jnp.cos(angle)).astype(jnp.float32)


@functools.partial(jax.jit, static_argnames=("heads",))
def tiny_bert_forward(tokens, params, *, heads):
    # mask = (x > 0) broadcast over heads & query positions (pure key mask).
    key_mask = (tokens > 0).astype(jnp.float32)[:, None, :]        # [B, 1, S]
    # TODO(synk): the token-id gather stays in plain JAX (jnp.take); for very
    # large vocab tables this would become a scalar-prefetch DMA-gather kernel.
    x = jnp.take(params["token_emb"], tokens, axis=0) + params["pe"][None]
    # TODO(synk): layer weights could be prefetched cross-pallas_call (P10) to
    # hide per-layer weight DMA behind the previous layer's compute.
    for lp in params["layers"]:          # dropout layers are identity (eval)
        x = encoder_layer(x, key_mask, lp, heads=heads)
    return x


def tiny_bert_reference(tokens, params, *, heads):
    """Pure-JAX reference mirroring the kernel's bf16/f32 mixed precision."""
    bf16, f32 = jnp.bfloat16, jnp.float32
    x = jnp.take(params["token_emb"], tokens, axis=0) + params["pe"][None]
    B, S, D = x.shape
    dk = D // heads
    scale = 1.0 / math.sqrt(dk)
    kbias = jnp.where(tokens > 0, 0.0, -1e9).astype(f32)[:, None, None, :]

    def layer_norm(y, g, b):
        mu = jnp.mean(y, axis=-1, keepdims=True)
        mu2 = jnp.mean(y * y, axis=-1, keepdims=True)
        return (y - mu) * jax.lax.rsqrt(mu2 - mu * mu + 1e-5) * g + b

    for lp in params["layers"]:
        xb = x.astype(bf16)
        qkv = jnp.dot(xb, lp["wqkv"], preferred_element_type=f32) + lp["bqkv"]
        q = (qkv[..., :D] * scale).astype(bf16)
        k = qkv[..., D:2 * D].astype(bf16)
        v = qkv[..., 2 * D:].astype(bf16)
        qh = q.reshape(B, S, heads, dk).transpose(0, 2, 1, 3)
        kh = k.reshape(B, S, heads, dk).transpose(0, 2, 1, 3)
        vh = v.reshape(B, S, heads, dk).transpose(0, 2, 1, 3)
        s = jnp.einsum("bhqd,bhkd->bhqk", qh, kh,
                       preferred_element_type=f32) + kbias
        p = jax.nn.softmax(s, axis=-1)
        ctx = jnp.einsum("bhqk,bhkd->bhqd", p.astype(bf16), vh,
                         preferred_element_type=f32)
        ctx = ctx.transpose(0, 2, 1, 3).reshape(B, S, D)
        bo, g_ln, b_ln, b2 = (lp["vecs"][0], lp["vecs"][1],
                              lp["vecs"][2], lp["vecs"][3])
        attn = jnp.dot(ctx.astype(bf16), lp["wo"],
                       preferred_element_type=f32) + bo
        h1 = layer_norm(attn + x, g_ln, b_ln)
        f = jnp.dot(h1.astype(bf16), lp["w1"],
                    preferred_element_type=f32) + lp["b1"]
        gact = jax.nn.gelu(f, approximate=True)
        ffn = jnp.dot(gact.astype(bf16), lp["w2"],
                      preferred_element_type=f32) + b2
        x = layer_norm(ffn + h1, g_ln, b_ln)
    return x


# ---------------------------------------------------------------------------
# Parameter init (weights packed for the kernel)
# ---------------------------------------------------------------------------
def init_params(key, *, vocab_size, d_model, n_layers, heads, seq_len):
    del heads  # shapes do not depend on head count
    ff = 4 * d_model
    k_tok, key = jax.random.split(key)
    token_emb = jax.random.normal(k_tok, (vocab_size, d_model), jnp.float32)
    token_emb = token_emb.at[0].set(0.0)        # nn.Embedding(padding_idx=0)
    pe = positional_embedding(seq_len, d_model)

    def linear(k, din, dout):
        kw, kb = jax.random.split(k)
        bound = 1.0 / math.sqrt(din)
        w = jax.random.uniform(kw, (din, dout), jnp.float32, -bound, bound)
        b = jax.random.uniform(kb, (dout,), jnp.float32, -bound, bound)
        return w, b

    layers = []
    for _ in range(n_layers):
        ks = jax.random.split(key, 7)
        key = ks[0]
        wq, bq = linear(ks[1], d_model, d_model)
        wk, bk = linear(ks[2], d_model, d_model)
        wv, bv = linear(ks[3], d_model, d_model)
        wo, bo = linear(ks[4], d_model, d_model)
        w1, b1 = linear(ks[5], d_model, ff)
        w2, b2 = linear(ks[6], ff, d_model)
        ln_g = jnp.ones((d_model,), jnp.float32)
        ln_b = jnp.zeros((d_model,), jnp.float32)
        layers.append(dict(
            # fused QKV weight/bias (weights bf16, biases f32)
            wqkv=jnp.concatenate([wq, wk, wv], axis=1).astype(jnp.bfloat16),
            bqkv=jnp.concatenate([bq, bk, bv])[None, :],
            wo=wo.astype(jnp.bfloat16),
            # packed small vectors: [bo ; ln_gamma ; ln_beta ; b2]  -> (4, D)
            vecs=jnp.stack([bo, ln_g, ln_b, b2], axis=0),
            w1=w1.astype(jnp.bfloat16), b1=b1[None, :],
            w2=w2.astype(jnp.bfloat16)))
    return dict(token_emb=token_emb, pe=pe, layers=layers)


# ---------------------------------------------------------------------------
if __name__ == "__main__":
    batch, seq, d_model, heads, n_layers, vocab_size = 2, 8, 32, 4, 2, 64

    key = jax.random.PRNGKey(0)
    k_params, k_tok = jax.random.split(key)
    params = init_params(k_params, vocab_size=vocab_size, d_model=d_model,
                         n_layers=n_layers, heads=heads, seq_len=seq)

    tokens = jax.random.randint(k_tok, (batch, seq), 0, vocab_size,
                                dtype=jnp.int32)
    tokens = tokens.at[:, 0].set(1)    # at least one unmasked key per sequence
    tokens = tokens.at[:, -1].set(0)   # and at least one padded key (mask path)

    out = tiny_bert_forward(tokens, params, heads=heads)
    out = jax.block_until_ready(out)

    ref = tiny_bert_reference(tokens, params, heads=heads)
    assert out.shape == (batch, seq, d_model)
    max_err = float(jnp.max(jnp.abs(out - ref)))
    assert jnp.allclose(out, ref, atol=2e-2, rtol=2e-2), f"max abs err {max_err}"

    print("KERNEL_OK")
</pallas_src>

<mosaic_0001>
module attributes {stable_mosaic.version = 11 : i64} {
  func.func @_encoder_layer_kernel(%arg0: i32, %arg1: memref<2x8x32xf32, #tpu.memory_space<vmem>>, %arg2: memref<2x1x8xf32, #tpu.memory_space<vmem>>, %arg3: memref<32x96xbf16, #tpu.memory_space<vmem>>, %arg4: memref<1x96xf32, #tpu.memory_space<vmem>>, %arg5: memref<32x32xbf16, #tpu.memory_space<vmem>>, %arg6: memref<4x32xf32, #tpu.memory_space<vmem>>, %arg7: memref<32x128xbf16, #tpu.memory_space<vmem>>, %arg8: memref<1x128xf32, #tpu.memory_space<vmem>>, %arg9: memref<128x32xbf16, #tpu.memory_space<vmem>>, %arg10: memref<2x8x32xf32, #tpu.memory_space<vmem>>, %arg11: memref<16x32xf32, #tpu.memory_space<vmem>>) attributes {dimension_semantics = [#tpu.dimension_semantics<parallel>], iteration_bounds = array<i64: 1>, scalar_prefetch = 0 : i64, scratch_operands = 1 : i64, tpu.core_type = #tpu.core_type<tc>, window_params = [{transform_indices = @transform_0, window_bounds = array<i64: 2, 8, 32>}, {transform_indices = @transform_1, window_bounds = array<i64: 2, 1, 8>}, {pipeline_mode = #tpu.pipeline_mode<synchronous>, transform_indices = @transform_2, window_bounds = array<i64: 32, 96>}, {pipeline_mode = #tpu.pipeline_mode<synchronous>, transform_indices = @transform_3, window_bounds = array<i64: 1, 96>}, {pipeline_mode = #tpu.pipeline_mode<synchronous>, transform_indices = @transform_4, window_bounds = array<i64: 32, 32>}, {pipeline_mode = #tpu.pipeline_mode<synchronous>, transform_indices = @transform_5, window_bounds = array<i64: 4, 32>}, {pipeline_mode = #tpu.pipeline_mode<synchronous>, transform_indices = @transform_6, window_bounds = array<i64: 32, 128>}, {pipeline_mode = #tpu.pipeline_mode<synchronous>, transform_indices = @transform_7, window_bounds = array<i64: 1, 128>}, {pipeline_mode = #tpu.pipeline_mode<synchronous>, transform_indices = @transform_8, window_bounds = array<i64: 128, 32>}, {transform_indices = @transform_9, window_bounds = array<i64: 2, 8, 32>}]} {
    %c0 = arith.constant 0 : index
    %c0_0 = arith.constant 0 : index
    %c0_1 = arith.constant 0 : index
    %0 = vector.load %arg1[%c0, %c0_0, %c0_1] : memref<2x8x32xf32, #tpu.memory_space<vmem>>, vector<2x8x32xf32>
    %1 = vector.shape_cast %0 : vector<2x8x32xf32> to vector<16x32xf32>
    %2 = arith.truncf %1 : vector<16x32xf32> to vector<16x32xbf16>
    %c0_2 = arith.constant 0 : index
    %c0_3 = arith.constant 0 : index
    %3 = vector.load %arg3[%c0_2, %c0_3] : memref<32x96xbf16, #tpu.memory_space<vmem>>, vector<32x96xbf16>
    %cst = arith.constant dense<0.000000e+00> : vector<16x96xf32>
    %4 = tpu.matmul %2, %3, %cst {dimension_numbers = #tpu.dot_dimension_numbers<[1], [0], [0], [1], [0, 0, 1, 1], [], []>} : vector<16x32xbf16>, vector<32x96xbf16>, vector<16x96xf32> -> vector<16x96xf32>
    %c0_4 = arith.constant 0 : index
    %c0_5 = arith.constant 0 : index
    %5 = vector.load %arg4[%c0_4, %c0_5] : memref<1x96xf32, #tpu.memory_space<vmem>>, vector<1x96xf32>
    %6 = vector.broadcast %5 : vector<1x96xf32> to vector<16x96xf32>
    %7 = arith.addf %4, %6 : vector<16x96xf32>
    %8 = vector.extract_strided_slice %7 {offsets = [0, 0], sizes = [16, 32], strides = [1, 1]} : vector<16x96xf32> to vector<16x32xf32>
    %cst_6 = arith.constant 0.353553385 : f32
    %9 = vector.broadcast %cst_6 : f32 to vector<16x32xf32>
    %10 = arith.mulf %8, %9 : vector<16x32xf32>
    %11 = arith.truncf %10 : vector<16x32xf32> to vector<16x32xbf16>
    %12 = vector.extract_strided_slice %7 {offsets = [0, 32], sizes = [16, 32], strides = [1, 1]} : vector<16x96xf32> to vector<16x32xf32>
    %13 = arith.truncf %12 : vector<16x32xf32> to vector<16x32xbf16>
    %14 = vector.extract_strided_slice %7 {offsets = [0, 64], sizes = [16, 32], strides = [1, 1]} : vector<16x96xf32> to vector<16x32xf32>
    %15 = arith.truncf %14 : vector<16x32xf32> to vector<16x32xbf16>
    %c0_7 = arith.constant 0 : index
    %c0_8 = arith.constant 0 : index
    %c0_9 = arith.constant 0 : index
    %16 = vector.load %arg2[%c0_7, %c0_8, %c0_9] : memref<2x1x8xf32, #tpu.memory_space<vmem>>, vector<1x1x8xf32>
    %17 = vector.shape_cast %16 : vector<1x1x8xf32> to vector<1x8xf32>
    %cst_10 = arith.constant 0.000000e+00 : f32
    %18 = vector.broadcast %cst_10 : f32 to vector<1x8xf32>
    %19 = arith.cmpf ogt, %17, %18 : vector<1x8xf32>
    %cst_11 = arith.constant 0.000000e+00 : f32
    %cst_12 = arith.constant -1.000000e+09 : f32
    %20 = vector.broadcast %cst_11 : f32 to vector<1x8xf32>
    %21 = vector.broadcast %cst_12 : f32 to vector<1x8xf32>
    %22 = arith.select %19, %20, %21 : vector<1x8xi1>, vector<1x8xf32>
    %23 = vector.extract_strided_slice %11 {offsets = [0, 0], sizes = [8, 8], strides = [1, 1]} : vector<16x32xbf16> to vector<8x8xbf16>
    %24 = vector.extract_strided_slice %13 {offsets = [0, 0], sizes = [8, 8], strides = [1, 1]} : vector<16x32xbf16> to vector<8x8xbf16>
    %25 = vector.extract_strided_slice %15 {offsets = [0, 0], sizes = [8, 8], strides = [1, 1]} : vector<16x32xbf16> to vector<8x8xbf16>
    %cst_13 = arith.constant dense<0.000000e+00> : vector<8x8xf32>
    %26 = tpu.matmul %23, %24, %cst_13 {dimension_numbers = #tpu.dot_dimension_numbers<[1], [1], [0], [0], [0, 0, 1, 0], [], []>} : vector<8x8xbf16>, vector<8x8xbf16>, vector<8x8xf32> -> vector<8x8xf32>
    %27 = vector.broadcast %22 : vector<1x8xf32> to vector<8x8xf32>
    %28 = arith.addf %26, %27 : vector<8x8xf32>
    %cst_14 = arith.constant dense<0xFF800000> : vector<8xf32>
    %29 = vector.multi_reduction <maximumf>, %28, %cst_14 [1] : vector<8x8xf32> to vector<8xf32>
    %30 = vector.shape_cast %29 : vector<8xf32> to vector<8x1xf32>
    %31 = vector.broadcast %30 : vector<8x1xf32> to vector<8x8xf32>
    %32 = arith.subf %28, %31 : vector<8x8xf32>
    %33 = math.exp %32 : vector<8x8xf32>
    %cst_15 = arith.constant dense<0.000000e+00> : vector<8xf32>
    %34 = vector.multi_reduction <add>, %33, %cst_15 [1] : vector<8x8xf32> to vector<8xf32>
    %35 = vector.shape_cast %34 : vector<8xf32> to vector<8x1xf32>
    %36 = tpu.reciprocal %35 {approx = true} : vector<8x1xf32> -> vector<8x1xf32>
    %37 = vector.broadcast %36 : vector<8x1xf32> to vector<8x8xf32>
    %38 = arith.mulf %33, %37 : vector<8x8xf32>
    %39 = arith.truncf %38 : vector<8x8xf32> to vector<8x8xbf16>
    %cst_16 = arith.constant dense<0.000000e+00> : vector<8x8xf32>
    %40 = tpu.matmul %39, %25, %cst_16 {dimension_numbers = #tpu.dot_dimension_numbers<[1], [0], [0], [1], [0, 0, 1, 1], [], []>} : vector<8x8xbf16>, vector<8x8xbf16>, vector<8x8xf32> -> vector<8x8xf32>
    %c0_17 = arith.constant 0 : index
    %c0_18 = arith.constant 0 : index
    %41 = vector.load %arg11[%c0_17, %c0_18] : memref<16x32xf32, #tpu.memory_space<vmem>>, vector<8x8xf32>
    tpu.vector_store %arg11[%c0_17, %c0_18], %40 {strides = array<i32>} : memref<16x32xf32, #tpu.memory_space<vmem>>, vector<8x8xf32>,
    %42 = vector.extract_strided_slice %11 {offsets = [0, 8], sizes = [8, 8], strides = [1, 1]} : vector<16x32xbf16> to vector<8x8xbf16>
    %43 = vector.extract_strided_slice %13 {offsets = [0, 8], sizes = [8, 8], strides = [1, 1]} : vector<16x32xbf16> to vector<8x8xbf16>
    %44 = vector.extract_strided_slice %15 {offsets = [0, 8], sizes = [8, 8], strides = [1, 1]} : vector<16x32xbf16> to vector<8x8xbf16>
    %cst_19 = arith.constant dense<0.000000e+00> : vector<8x8xf32>
    %45 = tpu.matmul %42, %43, %cst_19 {dimension_numbers = #tpu.dot_dimension_numbers<[1], [1], [0], [0], [0, 0, 1, 0], [], []>} : vector<8x8xbf16>, vector<8x8xbf16>, vector<8x8xf32> -> vector<8x8xf32>
    %46 = vector.broadcast %22 : vector<1x8xf32> to vector<8x8xf32>
    %47 = arith.addf %45, %46 : vector<8x8xf32>
    %cst_20 = arith.constant dense<0xFF800000> : vector<8xf32>
    %48 = vector.multi_reduction <maximumf>, %47, %cst_20 [1] : vector<8x8xf32> to vector<8xf32>
    %49 = vector.shape_cast %48 : vector<8xf32> to vector<8x1xf32>
    %50 = vector.broadcast %49 : vector<8x1xf32> to vector<8x8xf32>
    %51 = arith.subf %47, %50 : vector<8x8xf32>
    %52 = math.exp %51 : vector<8x8xf32>
    %cst_21 = arith.constant dense<0.000000e+00> : vector<8xf32>
    %53 = vector.multi_reduction <add>, %52, %cst_21 [1] : vector<8x8xf32> to vector<8xf32>
    %54 = vector.shape_cast %53 : vector<8xf32> to vector<8x1xf32>
    %55 = tpu.reciprocal %54 {approx = true} : vector<8x1xf32> -> vector<8x1xf32>
    %56 = vector.broadcast %55 : vector<8x1xf32> to vector<8x8xf32>
    %57 = arith.mulf %52, %56 : vector<8x8xf32>
    %58 = arith.truncf %57 : vector<8x8xf32> to vector<8x8xbf16>
    %cst_22 = arith.constant dense<0.000000e+00> : vector<8x8xf32>
    %59 = tpu.matmul %58, %44, %cst_22 {dimension_numbers = #tpu.dot_dimension_numbers<[1], [0], [0], [1], [0, 0, 1, 1], [], []>} : vector<8x8xbf16>, vector<8x8xbf16>, vector<8x8xf32> -> vector<8x8xf32>
    %c0_23 = arith.constant 0 : index
    %c8 = arith.constant 8 : index
    %60 = vector.load %arg11[%c0_23, %c8] : memref<16x32xf32, #tpu.memory_space<vmem>>, vector<8x8xf32>
    tpu.vector_store %arg11[%c0_23, %c8], %59 {strides = array<i32>} : memref<16x32xf32, #tpu.memory_space<vmem>>, vector<8x8xf32>,
    %61 = vector.extract_strided_slice %11 {offsets = [0, 16], sizes = [8, 8], strides = [1, 1]} : vector<16x32xbf16> to vector<8x8xbf16>
    %62 = vector.extract_strided_slice %13 {offsets = [0, 16], sizes = [8, 8], strides = [1, 1]} : vector<16x32xbf16> to vector<8x8xbf16>
    %63 = vector.extract_strided_slice %15 {offsets = [0, 16], sizes = [8, 8], strides = [1, 1]} : vector<16x32xbf16> to vector<8x8xbf16>
    %cst_24 = arith.constant dense<0.000000e+00> : vector<8x8xf32>
    %64 = tpu.matmul %61, %62, %cst_24 {dimension_numbers = #tpu.dot_dimension_numbers<[1], [1], [0], [0], [0, 0, 1, 0], [], []>} : vector<8x8xbf16>, vector<8x8xbf16>, vector<8x8xf32> -> vector<8x8xf32>
    %65 = vector.broadcast %22 : vector<1x8xf32> to vector<8x8xf32>
    %66 = arith.addf %64, %65 : vector<8x8xf32>
    %cst_25 = arith.constant dense<0xFF800000> : vector<8xf32>
    %67 = vector.multi_reduction <maximumf>, %66, %cst_25 [1] : vector<8x8xf32> to vector<8xf32>
    %68 = vector.shape_cast %67 : vector<8xf32> to vector<8x1xf32>
    %69 = vector.broadcast %68 : vector<8x1xf32> to vector<8x8xf32>
    %70 = arith.subf %66, %69 : vector<8x8xf32>
    %71 = math.exp %70 : vector<8x8xf32>
    %cst_26 = arith.constant dense<0.000000e+00> : vector<8xf32>
    %72 = vector.multi_reduction <add>, %71, %cst_26 [1] : vector<8x8xf32> to vector<8xf32>
    %73 = vector.shape_cast %72 : vector<8xf32> to vector<8x1xf32>
    %74 = tpu.reciprocal %73 {approx = true} : vector<8x1xf32> -> vector<8x1xf32>
    %75 = vector.broadcast %74 : vector<8x1xf32> to vector<8x8xf32>
    %76 = arith.mulf %71, %75 : vector<8x8xf32>
    %77 = arith.truncf %76 : vector<8x8xf32> to vector<8x8xbf16>
    %cst_27 = arith.constant dense<0.000000e+00> : vector<8x8xf32>
    %78 = tpu.matmul %77, %63, %cst_27 {dimension_numbers = #tpu.dot_dimension_numbers<[1], [0], [0], [1], [0, 0, 1, 1], [], []>} : vector<8x8xbf16>, vector<8x8xbf16>, vector<8x8xf32> -> vector<8x8xf32>
    %c0_28 = arith.constant 0 : index
    %c16 = arith.constant 16 : index
    %79 = vector.load %arg11[%c0_28, %c16] : memref<16x32xf32, #tpu.memory_space<vmem>>, vector<8x8xf32>
    tpu.vector_store %arg11[%c0_28, %c16], %78 {strides = array<i32>} : memref<16x32xf32, #tpu.memory_space<vmem>>, vector<8x8xf32>,
    %80 = vector.extract_strided_slice %11 {offsets = [0, 24], sizes = [8, 8], strides = [1, 1]} : vector<16x32xbf16> to vector<8x8xbf16>
    %81 = vector.extract_strided_slice %13 {offsets = [0, 24], sizes = [8, 8], strides = [1, 1]} : vector<16x32xbf16> to vector<8x8xbf16>
    %82 = vector.extract_strided_slice %15 {offsets = [0, 24], sizes = [8, 8], strides = [1, 1]} : vector<16x32xbf16> to vector<8x8xbf16>
    %cst_29 = arith.constant dense<0.000000e+00> : vector<8x8xf32>
    %83 = tpu.matmul %80, %81, %cst_29 {dimension_numbers = #tpu.dot_dimension_numbers<[1], [1], [0], [0], [0, 0, 1, 0], [], []>} : vector<8x8xbf16>, vector<8x8xbf16>, vector<8x8xf32> -> vector<8x8xf32>
    %84 = vector.broadcast %22 : vector<1x8xf32> to vector<8x8xf32>
    %85 = arith.addf %83, %84 : vector<8x8xf32>
    %cst_30 = arith.constant dense<0xFF800000> : vector<8xf32>
    %86 = vector.multi_reduction <maximumf>, %85, %cst_30 [1] : vector<8x8xf32> to vector<8xf32>
    %87 = vector.shape_cast %86 : vector<8xf32> to vector<8x1xf32>
    %88 = vector.broadcast %87 : vector<8x1xf32> to vector<8x8xf32>
    %89 = arith.subf %85, %88 : vector<8x8xf32>
    %90 = math.exp %89 : vector<8x8xf32>
    %cst_31 = arith.constant dense<0.000000e+00> : vector<8xf32>
    %91 = vector.multi_reduction <add>, %90, %cst_31 [1] : vector<8x8xf32> to vector<8xf32>
    %92 = vector.shape_cast %91 : vector<8xf32> to vector<8x1xf32>
    %93 = tpu.reciprocal %92 {approx = true} : vector<8x1xf32> -> vector<8x1xf32>
    %94 = vector.broadcast %93 : vector<8x1xf32> to vector<8x8xf32>
    %95 = arith.mulf %90, %94 : vector<8x8xf32>
    %96 = arith.truncf %95 : vector<8x8xf32> to vector<8x8xbf16>
    %cst_32 = arith.constant dense<0.000000e+00> : vector<8x8xf32>
    %97 = tpu.matmul %96, %82, %cst_32 {dimension_numbers = #tpu.dot_dimension_numbers<[1], [0], [0], [1], [0, 0, 1, 1], [], []>} : vector<8x8xbf16>, vector<8x8xbf16>, vector<8x8xf32> -> vector<8x8xf32>
    %c0_33 = arith.constant 0 : index
    %c24 = arith.constant 24 : index
    %98 = vector.load %arg11[%c0_33, %c24] : memref<16x32xf32, #tpu.memory_space<vmem>>, vector<8x8xf32>
    tpu.vector_store %arg11[%c0_33, %c24], %97 {strides = array<i32>} : memref<16x32xf32, #tpu.memory_space<vmem>>, vector<8x8xf32>,
    %c1 = arith.constant 1 : index
    %c0_34 = arith.constant 0 : index
    %c0_35 = arith.constant 0 : index
    %99 = vector.load %arg2[%c1, %c0_34, %c0_35] : memref<2x1x8xf32, #tpu.memory_space<vmem>>, vector<1x1x8xf32>
    %100 = vector.shape_cast %99 : vector<1x1x8xf32> to vector<1x8xf32>
    %cst_36 = arith.constant 0.000000e+00 : f32
    %101 = vector.broadcast %cst_36 : f32 to vector<1x8xf32>
    %102 = arith.cmpf ogt, %100, %101 : vector<1x8xf32>
    %cst_37 = arith.constant 0.000000e+00 : f32
    %cst_38 = arith.constant -1.000000e+09 : f32
    %103 = vector.broadcast %cst_37 : f32 to vector<1x8xf32>
    %104 = vector.broadcast %cst_38 : f32 to vector<1x8xf32>
    %105 = arith.select %102, %103, %104 : vector<1x8xi1>, vector<1x8xf32>
    %106 = vector.extract_strided_slice %11 {offsets = [8, 0], sizes = [8, 8], strides = [1, 1]} : vector<16x32xbf16> to vector<8x8xbf16>
    %107 = vector.extract_strided_slice %13 {offsets = [8, 0], sizes = [8, 8], strides = [1, 1]} : vector<16x32xbf16> to vector<8x8xbf16>
    %108 = vector.extract_strided_slice %15 {offsets = [8, 0], sizes = [8, 8], strides = [1, 1]} : vector<16x32xbf16> to vector<8x8xbf16>
    %cst_39 = arith.constant dense<0.000000e+00> : vector<8x8xf32>
    %109 = tpu.matmul %106, %107, %cst_39 {dimension_numbers = #tpu.dot_dimension_numbers<[1], [1], [0], [0], [0, 0, 1, 0], [], []>} : vector<8x8xbf16>, vector<8x8xbf16>, vector<8x8xf32> -> vector<8x8xf32>
    %110 = vector.broadcast %105 : vector<1x8xf32> to vector<8x8xf32>
    %111 = arith.addf %109, %110 : vector<8x8xf32>
    %cst_40 = arith.constant dense<0xFF800000> : vector<8xf32>
    %112 = vector.multi_reduction <maximumf>, %111, %cst_40 [1] : vector<8x8xf32> to vector<8xf32>
    %113 = vector.shape_cast %112 : vector<8xf32> to vector<8x1xf32>
    %114 = vector.broadcast %113 : vector<8x1xf32> to vector<8x8xf32>
    %115 = arith.subf %111, %114 : vector<8x8xf32>
    %116 = math.exp %115 : vector<8x8xf32>
    %cst_41 = arith.constant dense<0.000000e+00> : vector<8xf32>
    %117 = vector.multi_reduction <add>, %116, %cst_41 [1] : vector<8x8xf32> to vector<8xf32>
    %118 = vector.shape_cast %117 : vector<8xf32> to vector<8x1xf32>
    %119 = tpu.reciprocal %118 {approx = true} : vector<8x1xf32> -> vector<8x1xf32>
    %120 = vector.broadcast %119 : vector<8x1xf32> to vector<8x8xf32>
    %121 = arith.mulf %116, %120 : vector<8x8xf32>
    %122 = arith.truncf %121 : vector<8x8xf32> to vector<8x8xbf16>
    %cst_42 = arith.constant dense<0.000000e+00> : vector<8x8xf32>
    %123 = tpu.matmul %122, %108, %cst_42 {dimension_numbers = #tpu.dot_dimension_numbers<[1], [0], [0], [1], [0, 0, 1, 1], [], []>} : vector<8x8xbf16>, vector<8x8xbf16>, vector<8x8xf32> -> vector<8x8xf32>
    %c8_43 = arith.constant 8 : index
    %c0_44 = arith.constant 0 : index
    %124 = vector.load %arg11[%c8_43, %c0_44] : memref<16x32xf32, #tpu.memory_space<vmem>>, vector<8x8xf32>
    tpu.vector_store %arg11[%c8_43, %c0_44], %123 {strides = array<i32>} : memref<16x32xf32, #tpu.memory_space<vmem>>, vector<8x8xf32>,
    %125 = vector.extract_strided_slice %11 {offsets = [8, 8], sizes = [8, 8], strides = [1, 1]} : vector<16x32xbf16> to vector<8x8xbf16>
    %126 = vector.extract_strided_slice %13 {offsets = [8, 8], sizes = [8, 8], strides = [1, 1]} : vector<16x32xbf16> to vector<8x8xbf16>
    %127 = vector.extract_strided_slice %15 {offsets = [8, 8], sizes = [8, 8], strides = [1, 1]} : vector<16x32xbf16> to vector<8x8xbf16>
    %cst_45 = arith.constant dense<0.000000e+00> : vector<8x8xf32>
    %128 = tpu.matmul %125, %126, %cst_45 {dimension_numbers = #tpu.dot_dimension_numbers<[1], [1], [0], [0], [0, 0, 1, 0], [], []>} : vector<8x8xbf16>, vector<8x8xbf16>, vector<8x8xf32> -> vector<8x8xf32>
    %129 = vector.broadcast %105 : vector<1x8xf32> to vector<8x8xf32>
    %130 = arith.addf %128, %129 : vector<8x8xf32>
    %cst_46 = arith.constant dense<0xFF800000> : vector<8xf32>
    %131 = vector.multi_reduction <maximumf>, %130, %cst_46 [1] : vector<8x8xf32> to vector<8xf32>
    %132 = vector.shape_cast %131 : vector<8xf32> to vector<8x1xf32>
    %133 = vector.broadcast %132 : vector<8x1xf32> to vector<8x8xf32>
    %134 = arith.subf %130, %133 : vector<8x8xf32>
    %135 = math.exp %134 : vector<8x8xf32>
    %cst_47 = arith.constant dense<0.000000e+00> : vector<8xf32>
    %136 = vector.multi_reduction <add>, %135, %cst_47 [1] : vector<8x8xf32> to vector<8xf32>
    %137 = vector.shape_cast %136 : vector<8xf32> to vector<8x1xf32>
    %138 = tpu.reciprocal %137 {approx = true} : vector<8x1xf32> -> vector<8x1xf32>
    %139 = vector.broadcast %138 : vector<8x1xf32> to vector<8x8xf32>
    %140 = arith.mulf %135, %139 : vector<8x8xf32>
    %141 = arith.truncf %140 : vector<8x8xf32> to vector<8x8xbf16>
    %cst_48 = arith.constant dense<0.000000e+00> : vector<8x8xf32>
    %142 = tpu.matmul %141, %127, %cst_48 {dimension_numbers = #tpu.dot_dimension_numbers<[1], [0], [0], [1], [0, 0, 1, 1], [], []>} : vector<8x8xbf16>, vector<8x8xbf16>, vector<8x8xf32> -> vector<8x8xf32>
    %c8_49 = arith.constant 8 : index
    %c8_50 = arith.constant 8 : index
    %143 = vector.load %arg11[%c8_49, %c8_50] : memref<16x32xf32, #tpu.memory_space<vmem>>, vector<8x8xf32>
    tpu.vector_store %arg11[%c8_49, %c8_50], %142 {strides = array<i32>} : memref<16x32xf32, #tpu.memory_space<vmem>>, vector<8x8xf32>,
    %144 = vector.extract_strided_slice %11 {offsets = [8, 16], sizes = [8, 8], strides = [1, 1]} : vector<16x32xbf16> to vector<8x8xbf16>
    %145 = vector.extract_strided_slice %13 {offsets = [8, 16], sizes = [8, 8], strides = [1, 1]} : vector<16x32xbf16> to vector<8x8xbf16>
    %146 = vector.extract_strided_slice %15 {offsets = [8, 16], sizes = [8, 8], strides = [1, 1]} : vector<16x32xbf16> to vector<8x8xbf16>
    %cst_51 = arith.constant dense<0.000000e+00> : vector<8x8xf32>
    %147 = tpu.matmul %144, %145, %cst_51 {dimension_numbers = #tpu.dot_dimension_numbers<[1], [1], [0], [0], [0, 0, 1, 0], [], []>} : vector<8x8xbf16>, vector<8x8xbf16>, vector<8x8xf32> -> vector<8x8xf32>
    %148 = vector.broadcast %105 : vector<1x8xf32> to vector<8x8xf32>
    %149 = arith.addf %147, %148 : vector<8x8xf32>
    %cst_52 = arith.constant dense<0xFF800000> : vector<8xf32>
    %150 = vector.multi_reduction <maximumf>, %149, %cst_52 [1] : vector<8x8xf32> to vector<8xf32>
    %151 = vector.shape_cast %150 : vector<8xf32> to vector<8x1xf32>
    %152 = vector.broadcast %151 : vector<8x1xf32> to vector<8x8xf32>
    %153 = arith.subf %149, %152 : vector<8x8xf32>
    %154 = math.exp %153 : vector<8x8xf32>
    %cst_53 = arith.constant dense<0.000000e+00> : vector<8xf32>
    %155 = vector.multi_reduction <add>, %154, %cst_53 [1] : vector<8x8xf32> to vector<8xf32>
    %156 = vector.shape_cast %155 : vector<8xf32> to vector<8x1xf32>
    %157 = tpu.reciprocal %156 {approx = true} : vector<8x1xf32> -> vector<8x1xf32>
    %158 = vector.broadcast %157 : vector<8x1xf32> to vector<8x8xf32>
    %159 = arith.mulf %154, %158 : vector<8x8xf32>
    %160 = arith.truncf %159 : vector<8x8xf32> to vector<8x8xbf16>
    %cst_54 = arith.constant dense<0.000000e+00> : vector<8x8xf32>
    %161 = tpu.matmul %160, %146, %cst_54 {dimension_numbers = #tpu.dot_dimension_numbers<[1], [0], [0], [1], [0, 0, 1, 1], [], []>} : vector<8x8xbf16>, vector<8x8xbf16>, vector<8x8xf32> -> vector<8x8xf32>
    %c8_55 = arith.constant 8 : index
    %c16_56 = arith.constant 16 : index
    %162 = vector.load %arg11[%c8_55, %c16_56] : memref<16x32xf32, #tpu.memory_space<vmem>>, vector<8x8xf32>
    tpu.vector_store %arg11[%c8_55, %c16_56], %161 {strides = array<i32>} : memref<16x32xf32, #tpu.memory_space<vmem>>, vector<8x8xf32>,
    %163 = vector.extract_strided_slice %11 {offsets = [8, 24], sizes = [8, 8], strides = [1, 1]} : vector<16x32xbf16> to vector<8x8xbf16>
    %164 = vector.extract_strided_slice %13 {offsets = [8, 24], sizes = [8, 8], strides = [1, 1]} : vector<16x32xbf16> to vector<8x8xbf16>
    %165 = vector.extract_strided_slice %15 {offsets = [8, 24], sizes = [8, 8], strides = [1, 1]} : vector<16x32xbf16> to vector<8x8xbf16>
    %cst_57 = arith.constant dense<0.000000e+00> : vector<8x8xf32>
    %166 = tpu.matmul %163, %164, %cst_57 {dimension_numbers = #tpu.dot_dimension_numbers<[1], [1], [0], [0], [0, 0, 1, 0], [], []>} : vector<8x8xbf16>, vector<8x8xbf16>, vector<8x8xf32> -> vector<8x8xf32>
    %167 = vector.broadcast %105 : vector<1x8xf32> to vector<8x8xf32>
    %168 = arith.addf %166, %167 : vector<8x8xf32>
    %cst_58 = arith.constant dense<0xFF800000> : vector<8xf32>
    %169 = vector.multi_reduction <maximumf>, %168, %cst_58 [1] : vector<8x8xf32> to vector<8xf32>
    %170 = vector.shape_cast %169 : vector<8xf32> to vector<8x1xf32>
    %171 = vector.broadcast %170 : vector<8x1xf32> to vector<8x8xf32>
    %172 = arith.subf %168, %171 : vector<8x8xf32>
    %173 = math.exp %172 : vector<8x8xf32>
    %cst_59 = arith.constant dense<0.000000e+00> : vector<8xf32>
    %174 = vector.multi_reduction <add>, %173, %cst_59 [1] : vector<8x8xf32> to vector<8xf32>
    %175 = vector.shape_cast %174 : vector<8xf32> to vector<8x1xf32>
    %176 = tpu.reciprocal %175 {approx = true} : vector<8x1xf32> -> vector<8x1xf32>
    %177 = vector.broadcast %176 : vector<8x1xf32> to vector<8x8xf32>
    %178 = arith.mulf %173, %177 : vector<8x8xf32>
    %179 = arith.truncf %178 : vector<8x8xf32> to vector<8x8xbf16>
    %cst_60 = arith.constant dense<0.000000e+00> : vector<8x8xf32>
    %180 = tpu.matmul %179, %165, %cst_60 {dimension_numbers = #tpu.dot_dimension_numbers<[1], [0], [0], [1], [0, 0, 1, 1], [], []>} : vector<8x8xbf16>, vector<8x8xbf16>, vector<8x8xf32> -> vector<8x8xf32>
    %c8_61 = arith.constant 8 : index
    %c24_62 = arith.constant 24 : index
    %181 = vector.load %arg11[%c8_61, %c24_62] : memref<16x32xf32, #tpu.memory_space<vmem>>, vector<8x8xf32>
    tpu.vector_store %arg11[%c8_61, %c24_62], %180 {strides = array<i32>} : memref<16x32xf32, #tpu.memory_space<vmem>>, vector<8x8xf32>,
    %c0_63 = arith.constant 0 : index
    %c0_64 = arith.constant 0 : index
    %182 = vector.load %arg11[%c0_63, %c0_64] : memref<16x32xf32, #tpu.memory_space<vmem>>, vector<16x32xf32>
    %183 = arith.truncf %182 : vector<16x32xf32> to vector<16x32xbf16>
    %c0_65 = arith.constant 0 : index
    %c0_66 = arith.constant 0 : index
    %184 = vector.load %arg5[%c0_65, %c0_66] : memref<32x32xbf16, #tpu.memory_space<vmem>>, vector<32x32xbf16>
    %cst_67 = arith.constant dense<0.000000e+00> : vector<16x32xf32>
    %185 = tpu.matmul %183, %184, %cst_67 {dimension_numbers = #tpu.dot_dimension_numbers<[1], [0], [0], [1], [0, 0, 1, 1], [], []>} : vector<16x32xbf16>, vector<32x32xbf16>, vector<16x32xf32> -> vector<16x32xf32>
    %c0_68 = arith.constant 0 : index
    %c0_69 = arith.constant 0 : index
    %186 = vector.load %arg6[%c0_68, %c0_69] : memref<4x32xf32, #tpu.memory_space<vmem>>, vector<1x32xf32>
    %187 = vector.broadcast %186 : vector<1x32xf32> to vector<16x32xf32>
    %188 = arith.addf %185, %187 : vector<16x32xf32>
    %c1_70 = arith.constant 1 : index
    %c0_71 = arith.constant 0 : index
    %189 = vector.load %arg6[%c1_70, %c0_71] : memref<4x32xf32, #tpu.memory_space<vmem>>, vector<1x32xf32>
    %c2 = arith.constant 2 : index
    %c0_72 = arith.constant 0 : index
    %190 = vector.load %arg6[%c2, %c0_72] : memref<4x32xf32, #tpu.memory_space<vmem>>, vector<1x32xf32>
    %191 = arith.addf %188, %1 : vector<16x32xf32>
    %cst_73 = arith.constant dense<0.000000e+00> : vector<16xf32>
    %192 = vector.multi_reduction <add>, %191, %cst_73 [1] : vector<16x32xf32> to vector<16xf32>
    %193 = vector.shape_cast %192 : vector<16xf32> to vector<16x1xf32>
    %cst_74 = arith.constant 3.200000e+01 : f32
    %194 = vector.broadcast %cst_74 : f32 to vector<16x1xf32>
    %195 = arith.divf %193, %194 : vector<16x1xf32>
    %196 = arith.mulf %191, %191 : vector<16x32xf32>
    %cst_75 = arith.constant dense<0.000000e+00> : vector<16xf32>
    %197 = vector.multi_reduction <add>, %196, %cst_75 [1] : vector<16x32xf32> to vector<16xf32>
    %198 = vector.shape_cast %197 : vector<16xf32> to vector<16x1xf32>
    %cst_76 = arith.constant 3.200000e+01 : f32
    %199 = vector.broadcast %cst_76 : f32 to vector<16x1xf32>
    %200 = arith.divf %198, %199 : vector<16x1xf32>
    %201 = arith.mulf %195, %195 : vector<16x1xf32>
    %202 = arith.subf %200, %201 : vector<16x1xf32>
    %203 = vector.broadcast %195 : vector<16x1xf32> to vector<16x32xf32>
    %204 = arith.subf %191, %203 : vector<16x32xf32>
    %cst_77 = arith.constant 9.99999974E-6 : f32
    %205 = vector.broadcast %cst_77 : f32 to vector<16x1xf32>
    %206 = arith.addf %202, %205 : vector<16x1xf32>
    %207 = math.rsqrt %206 : vector<16x1xf32>
    %208 = vector.broadcast %207 : vector<16x1xf32> to vector<16x32xf32>
    %209 = arith.mulf %204, %208 : vector<16x32xf32>
    %210 = vector.broadcast %189 : vector<1x32xf32> to vector<16x32xf32>
    %211 = arith.mulf %209, %210 : vector<16x32xf32>
    %212 = vector.broadcast %190 : vector<1x32xf32> to vector<16x32xf32>
    %213 = arith.addf %211, %212 : vector<16x32xf32>
    %214 = arith.truncf %213 : vector<16x32xf32> to vector<16x32xbf16>
    %c0_78 = arith.constant 0 : index
    %c0_79 = arith.constant 0 : index
    %215 = vector.load %arg7[%c0_78, %c0_79] : memref<32x128xbf16, #tpu.memory_space<vmem>>, vector<32x128xbf16>
    %cst_80 = arith.constant dense<0.000000e+00> : vector<16x128xf32>
    %216 = tpu.matmul %214, %215, %cst_80 {dimension_numbers = #tpu.dot_dimension_numbers<[1], [0], [0], [1], [0, 0, 1, 1], [], []>} : vector<16x32xbf16>, vector<32x128xbf16>, vector<16x128xf32> -> vector<16x128xf32>
    %c0_81 = arith.constant 0 : index
    %c0_82 = arith.constant 0 : index
    %217 = vector.load %arg8[%c0_81, %c0_82] : memref<1x128xf32, #tpu.memory_space<vmem>>, vector<1x128xf32>
    %218 = vector.broadcast %217 : vector<1x128xf32> to vector<16x128xf32>
    %219 = arith.addf %216, %218 : vector<16x128xf32>
    %220 = arith.mulf %219, %219 : vector<16x128xf32>
    %221 = arith.mulf %219, %220 : vector<16x128xf32>
    %cst_83 = arith.constant 4.471500e-02 : f32
    %222 = vector.broadcast %cst_83 : f32 to vector<16x128xf32>
    %223 = arith.mulf %222, %221 : vector<16x128xf32>
    %224 = arith.addf %219, %223 : vector<16x128xf32>
    %cst_84 = arith.constant 0.797884583 : f32
    %225 = vector.broadcast %cst_84 : f32 to vector<16x128xf32>
    %226 = arith.mulf %225, %224 : vector<16x128xf32>
    %227 = math.tanh %226 : vector<16x128xf32>
    %cst_85 = arith.constant 1.000000e+00 : f32
    %228 = vector.broadcast %cst_85 : f32 to vector<16x128xf32>
    %229 = arith.addf %228, %227 : vector<16x128xf32>
    %cst_86 = arith.constant 5.000000e-01 : f32
    %230 = vector.broadcast %cst_86 : f32 to vector<16x128xf32>
    %231 = arith.mulf %230, %229 : vector<16x128xf32>
    %232 = arith.mulf %219, %231 : vector<16x128xf32>
    %233 = arith.truncf %232 : vector<16x128xf32> to vector<16x128xbf16>
    %c0_87 = arith.constant 0 : index
    %c0_88 = arith.constant 0 : index
    %234 = vector.load %arg9[%c0_87, %c0_88] : memref<128x32xbf16, #tpu.memory_space<vmem>>, vector<128x32xbf16>
    %cst_89 = arith.constant dense<0.000000e+00> : vector<16x32xf32>
    %235 = tpu.matmul %233, %234, %cst_89 {dimension_numbers = #tpu.dot_dimension_numbers<[1], [0], [0], [1], [0, 0, 1, 1], [], []>} : vector<16x128xbf16>, vector<128x32xbf16>, vector<16x32xf32> -> vector<16x32xf32>
    %c3 = arith.constant 3 : index
    %c0_90 = arith.constant 0 : index
    %236 = vector.load %arg6[%c3, %c0_90] : memref<4x32xf32, #tpu.memory_space<vmem>>, vector<1x32xf32>
    %237 = vector.broadcast %236 : vector<1x32xf32> to vector<16x32xf32>
    %238 = arith.addf %235, %237 : vector<16x32xf32>
    %239 = arith.addf %238, %213 : vector<16x32xf32>
    %cst_91 = arith.constant dense<0.000000e+00> : vector<16xf32>
    %240 = vector.multi_reduction <add>, %239, %cst_91 [1] : vector<16x32xf32> to vector<16xf32>
    %241 = vector.shape_cast %240 : vector<16xf32> to vector<16x1xf32>
    %cst_92 = arith.constant 3.200000e+01 : f32
    %242 = vector.broadcast %cst_92 : f32 to vector<16x1xf32>
    %243 = arith.divf %241, %242 : vector<16x1xf32>
    %244 = arith.mulf %239, %239 : vector<16x32xf32>
    %cst_93 = arith.constant dense<0.000000e+00> : vector<16xf32>
    %245 = vector.multi_reduction <add>, %244, %cst_93 [1] : vector<16x32xf32> to vector<16xf32>
    %246 = vector.shape_cast %245 : vector<16xf32> to vector<16x1xf32>
    %cst_94 = arith.constant 3.200000e+01 : f32
    %247 = vector.broadcast %cst_94 : f32 to vector<16x1xf32>
    %248 = arith.divf %246, %247 : vector<16x1xf32>
    %249 = arith.mulf %243, %243 : vector<16x1xf32>
    %250 = arith.subf %248, %249 : vector<16x1xf32>
    %251 = vector.broadcast %243 : vector<16x1xf32> to vector<16x32xf32>
    %252 = arith.subf %239, %251 : vector<16x32xf32>
    %cst_95 = arith.constant 9.99999974E-6 : f32
    %253 = vector.broadcast %cst_95 : f32 to vector<16x1xf32>
    %254 = arith.addf %250, %253 : vector<16x1xf32>
    %255 = math.rsqrt %254 : vector<16x1xf32>
    %256 = vector.broadcast %255 : vector<16x1xf32> to vector<16x32xf32>
    %257 = arith.mulf %252, %256 : vector<16x32xf32>
    %258 = vector.broadcast %189 : vector<1x32xf32> to vector<16x32xf32>
    %259 = arith.mulf %257, %258 : vector<16x32xf32>
    %260 = vector.broadcast %190 : vector<1x32xf32> to vector<16x32xf32>
    %261 = arith.addf %259, %260 : vector<16x32xf32>
    %262 = vector.shape_cast %261 : vector<16x32xf32> to vector<2x8x32xf32>
    %c0_96 = arith.constant 0 : index
    %c0_97 = arith.constant 0 : index
    %c0_98 = arith.constant 0 : index
    %263 = vector.load %arg10[%c0_96, %c0_97, %c0_98] : memref<2x8x32xf32, #tpu.memory_space<vmem>>, vector<2x8x32xf32>
    tpu.vector_store %arg10[%c0_96, %c0_97, %c0_98], %262 {strides = array<i32>} : memref<2x8x32xf32, #tpu.memory_space<vmem>>, vector<2x8x32xf32>,
    return
  }
  func.func @transform_0(%arg0: i32) -> (i32, i32, i32) {
    %c0_i32 = arith.constant 0 : i32
    %c0_i32_0 = arith.constant 0 : i32
    %c0_i32_1 = arith.constant 0 : i32
    return %arg0, %c0_i32, %c0_i32_0 : i32, i32, i32
  }
  func.func @transform_1(%arg0: i32) -> (i32, i32, i32) {
    %c0_i32 = arith.constant 0 : i32
    %c0_i32_0 = arith.constant 0 : i32
    %c0_i32_1 = arith.constant 0 : i32
    return %arg0, %c0_i32, %c0_i32_0 : i32, i32, i32
  }
  func.func @transform_2(%arg0: i32) -> (i32, i32) {
    %c0_i32 = arith.constant 0 : i32
    %c0_i32_0 = arith.constant 0 : i32
    %c0_i32_1 = arith.constant 0 : i32
    return %c0_i32, %c0_i32_0 : i32, i32
  }
  func.func @transform_3(%arg0: i32) -> (i32, i32) {
    %c0_i32 = arith.constant 0 : i32
    %c0_i32_0 = arith.constant 0 : i32
    %c0_i32_1 = arith.constant 0 : i32
    return %c0_i32, %c0_i32_0 : i32, i32
  }
  func.func @transform_4(%arg0: i32) -> (i32, i32) {
    %c0_i32 = arith.constant 0 : i32
    %c0_i32_0 = arith.constant 0 : i32
    %c0_i32_1 = arith.constant 0 : i32
    return %c0_i32, %c0_i32_0 : i32, i32
  }
  func.func @transform_5(%arg0: i32) -> (i32, i32) {
    %c0_i32 = arith.constant 0 : i32
    %c0_i32_0 = arith.constant 0 : i32
    %c0_i32_1 = arith.constant 0 : i32
    return %c0_i32, %c0_i32_0 : i32, i32
  }
  func.func @transform_6(%arg0: i32) -> (i32, i32) {
    %c0_i32 = arith.constant 0 : i32
    %c0_i32_0 = arith.constant 0 : i32
    %c0_i32_1 = arith.constant 0 : i32
    return %c0_i32, %c0_i32_0 : i32, i32
  }
  func.func @transform_7(%arg0: i32) -> (i32, i32) {
    %c0_i32 = arith.constant 0 : i32
    %c0_i32_0 = arith.constant 0 : i32
    %c0_i32_1 = arith.constant 0 : i32
    return %c0_i32, %c0_i32_0 : i32, i32
  }
  func.func @transform_8(%arg0: i32) -> (i32, i32) {
    %c0_i32 = arith.constant 0 : i32
    %c0_i32_0 = arith.constant 0 : i32
    %c0_i32_1 = arith.constant 0 : i32
    return %c0_i32, %c0_i32_0 : i32, i32
  }
  func.func @transform_9(%arg0: i32) -> (i32, i32, i32) {
    %c0_i32 = arith.constant 0 : i32
    %c0_i32_0 = arith.constant 0 : i32
    %c0_i32_1 = arith.constant 0 : i32
    return %arg0, %c0_i32, %c0_i32_0 : i32, i32, i32
  }
}

</mosaic_0001>

<bundles_post_ra>
// kernel: tiny_bert_forward.2
= control target key start
LH: loop header
LB: loop body
LE: loop exit
PB: predicated region body
PF: predicated region fallthrough
CT: control target
= control target key end

     0   :  { %14 = vsyncpa [#allocation4], 0  ;;  %s2546_s0 = inlined_call_operand.hbm [shape: f32[2,8,32], index: 0, kind: input, shape index: {}]   ;;  %s2547_s1 = inlined_call_operand.hbm [shape: f32[2,1,8], index: 1, kind: input, shape index: {}]   ;;  %s2548_s2 = inlined_call_operand.hbm [shape: bf16[32,96], index: 2, kind: input, shape index: {}]   ;;  %s2549_s3 = inlined_call_operand.hbm [shape: f32[1,96], index: 3, kind: input, shape index: {}]   ;;  %s2550_s4 = inlined_call_operand.hbm [shape: bf16[32,32], index: 4, kind: input, shape index: {}]   ;;  %s2551_s5 = inlined_call_operand.hbm [shape: f32[4,32], index: 5, kind: input, shape index: {}]   ;;  %s2552_s6 = inlined_call_operand.hbm [shape: bf16[32,128], index: 6, kind: input, shape index: {}]   ;;  %s2553_s7 = inlined_call_operand.hbm [shape: f32[1,128], index: 7, kind: input, shape index: {}]   ;;  %s2554_s8 = inlined_call_operand.hbm [shape: bf16[128,32], index: 8, kind: input, shape index: {}]   ;;  %s2555_s9 = inlined_call_operand.hbm [shape: f32[2,8,32], index: 9, kind: output, shape index: {}]  }
   0x1   :  { %15 = vsyncpa [#allocation7], 0 }
   0x2   :  { %16 = vsyncpa [#allocation10], 0 }
   0x3   :  { %17 = vsyncpa [#allocation13], 0 }
   0x4   :  { %18 = vsyncpa [#allocation16], 0 }
   0x5   :  { %19 = vsyncpa [#allocation5], 0  ;;  %s2081_s30 = smov [#allocation6]   ;;  %s1849_s13 = scalar_lea.hbm %s2547_s1, 32 }
   0x6   :  { %s37_s10 = sshll.u32 %s2081_s30, 4  ;;  %p1850_p0 = scmp.ne.s32.totalorder %s2547_s1, %s1849_s13  ;;  %s38_s10 = int_to_ptr.vmem [resolvable:$true] %s37_s10 }
   0x7   :  { %p1853_p1 = scmp.lt.u32.totalorder %s1849_s13, %s2547_s1 }
   0x9   :  { %p1855_p2 = pnand %p1853_p1, %p1850_p0 }
   0xb   :  { %1858 = shalt.err (!%p1855_p2)
}
   0xc   :  { %s1859_s18 = scalar_lea.vmem %s38_s10, 32  ;;  %p1864_p4 = scmp.lt.s32.totalorder %s38_s10, %s38_s10 }
   0xd   :  { %p1860_p3 = scmp.ne.s32.totalorder %s38_s10, %s1859_s18  ;;  %p1865_p5 = scmp.lt.s32.totalorder %s1859_s18, %s1859_s18 }
   0xf   :  { %p1866_p6 = por %p1865_p5, %p1864_p4 }
  0x11   :  { %p1867_p7 = pnand %p1866_p6, %p1860_p3 }
  0x13   :  { %1870 = shalt.err (!%p1867_p7)
}
  0x14   :  { %s2082_s19 = smov 16   ;;  %s2083_s20 = smov 1  }
  0x15   :  { %43 = dma.hbm_to_vmem [thread:$0]  %s2547_s1, 32, %s38_s10, [#allocation7], %s2082_s19, %s2082_s19, %s2083_s20  }
  0x16   :  { %s2084_s23 = smov [#allocation9]   ;;  %s2085_s25 = smov [#allocation12]  }
  0x17   :  { %s62_s24 = sshll.u32 %s2084_s23, 4  ;;  %s84_s26 = sshll.u32 %s2085_s25, 4  ;;  %s63_s24 = int_to_ptr.vmem [resolvable:$true] %s62_s24  ;;  %s85_s26 = int_to_ptr.vmem [resolvable:$true] %s84_s26 }
  0x18   :  { %s1871_s29 = scalar_lea.hbm %s2549_s3, 16 }
  0x19   :  { %p1872_p8 = scmp.ne.s32.totalorder %s2549_s3, %s1871_s29  ;;  %p1875_p9 = scmp.lt.u32.totalorder %s1871_s29, %s2549_s3 }
  0x1b   :  { %p1877_p10 = pnand %p1875_p9, %p1872_p8 }
  0x1d   :  { %1880 = shalt.err (!%p1877_p10)
}
  0x1e   :  { %s1881_s1 = scalar_lea.vmem %s63_s24, 16  ;;  %s1885_s10 = scalar_lea.vmem %s63_s24, 32 }
  0x1f   :  { %p1882_p11 = scmp.ne.s32.totalorder %s63_s24, %s1881_s1  ;;  %p1886_p12 = scmp.lt.s32.totalorder %s63_s24, %s63_s24 }
  0x20   :  { %p1887_p13 = scmp.lt.s32.totalorder %s1885_s10, %s1881_s1 }
  0x22   :  { %p1888_p0 = por %p1887_p13, %p1886_p12 }
  0x24   :  { %p1889_p1 = pnand %p1888_p0, %p1882_p11 }
  0x26   :  { %1892 = shalt.err (!%p1889_p1)
}
  0x27   :  { %65 = dma.hbm_to_vmem [thread:$0]  %s2549_s3, 16, %s63_s24, [#allocation10]  }
  0x28   :  { %s1893_s18 = scalar_lea.hbm %s2551_s5, 64 }
  0x29   :  { %p1894_p2 = scmp.ne.s32.totalorder %s2551_s5, %s1893_s18  ;;  %p1897_p3 = scmp.lt.u32.totalorder %s1893_s18, %s2551_s5 }
  0x2b   :  { %p1899_p4 = pnand %p1897_p3, %p1894_p2 }
  0x2d   :  { %1902 = shalt.err (!%p1899_p4)
}
  0x2e   :  { %s1903_s25 = scalar_lea.vmem %s85_s26, 64  ;;  %p1908_p6 = scmp.lt.s32.totalorder %s85_s26, %s85_s26 }
  0x2f   :  { %p1904_p5 = scmp.ne.s32.totalorder %s85_s26, %s1903_s25  ;;  %p1909_p7 = scmp.lt.s32.totalorder %s1903_s25, %s1903_s25 }
  0x31   :  { %p1910_p8 = por %p1909_p7, %p1908_p6 }
  0x33   :  { %p1911_p9 = pnand %p1910_p8, %p1904_p5 }
  0x35   :  { %1914 = shalt.err (!%p1911_p9)
}
  0x36   :  { %87 = dma.hbm_to_vmem [thread:$0]  %s2551_s5, 64, %s85_s26, [#allocation13]  }
  0x37   :  { %s2086_s27 = smov [#allocation15]   ;;  %s2087_s29 = smov [#allocation3]  }
  0x38   :  { %s106_s28 = sshll.u32 %s2086_s27, 4  ;;  %s25_s30 = sshll.u32 %s2087_s29, 4  ;;  %s107_s28 = int_to_ptr.vmem [resolvable:$true] %s106_s28  ;;  %s26_s30 = int_to_ptr.vmem [resolvable:$true] %s25_s30 }
  0x39   :  { %s1915_s13 = scalar_lea.hbm %s2553_s7, 16 }
  0x3a   :  { %p1916_p10 = scmp.ne.s32.totalorder %s2553_s7, %s1915_s13  ;;  %p1919_p11 = scmp.lt.u32.totalorder %s1915_s13, %s2553_s7 }
  0x3c   :  { %p1921_p12 = pnand %p1919_p11, %p1916_p10 }
  0x3e   :  { %1924 = shalt.err (!%p1921_p12)
}
  0x3f   :  { %s1925_s5 = scalar_lea.vmem %s107_s28, 16  ;;  %s1929_s26 = scalar_lea.vmem %s107_s28, 32 }
  0x40   :  { %p1926_p13 = scmp.ne.s32.totalorder %s107_s28, %s1925_s5  ;;  %p1930_p0 = scmp.lt.s32.totalorder %s107_s28, %s107_s28 }
  0x41   :  { %p1931_p1 = scmp.lt.s32.totalorder %s1929_s26, %s1925_s5 }
  0x43   :  { %p1932_p2 = por %p1931_p1, %p1930_p0 }
  0x45   :  { %p1933_p3 = pnand %p1932_p2, %p1926_p13 }
  0x47   :  { %1936 = shalt.err (!%p1933_p3)
}
  0x48   :  { %109 = dma.hbm_to_vmem [thread:$0]  %s2553_s7, 16, %s107_s28, [#allocation16]  }
  0x49   :  { %s1937_s21 = scalar_lea.hbm %s2546_s0, 256 }
  0x4a   :  { %p1938_p4 = scmp.ne.s32.totalorder %s2546_s0, %s1937_s21  ;;  %p1941_p5 = scmp.lt.u32.totalorder %s1937_s21, %s2546_s0 }
  0x4c   :  { %p1943_p6 = pnand %p1941_p5, %p1938_p4 }
  0x4e   :  { %1946 = shalt.err (!%p1943_p6)
}
  0x4f   :  { %s1947_s24 = scalar_lea.vmem %s26_s30, 256  ;;  %p1952_p8 = scmp.lt.s32.totalorder %s26_s30, %s26_s30 }
  0x50   :  { %p1948_p7 = scmp.ne.s32.totalorder %s26_s30, %s1947_s24  ;;  %p1953_p9 = scmp.lt.s32.totalorder %s1947_s24, %s1947_s24 }
  0x52   :  { %p1954_p10 = por %p1953_p9, %p1952_p8 }
  0x54   :  { %p1955_p11 = pnand %p1954_p10, %p1948_p7 }
  0x56   :  { %1958 = shalt.err (!%p1955_p11)
}
  0x57   :  { %s2088_s7 = smov 128   ;;  %s2089_s27 = smov 8  }
  0x58   :  { %31 = dma.hbm_to_vmem [thread:$0]  %s2546_s0, 256, %s26_s30, [#allocation4], %s2088_s7, %s2088_s7, %s2089_s27  }
  0x59   :  { %s2090_s11 = smov [#allocation8]   ;;  %s1959_s10 = scalar_lea.hbm %s2548_s2, 256 }
  0x5a   :  { %s49_s12 = sshll.u32 %s2090_s11, 4  ;;  %p1960_p12 = scmp.ne.s32.totalorder %s2548_s2, %s1959_s10  ;;  %s50_s12 = int_to_ptr.vmem [resolvable:$true] %s49_s12 }
  0x5b   :  { %p1963_p13 = scmp.lt.u32.totalorder %s1959_s10, %s2548_s2 }
  0x5d   :  { %p1965_p0 = pnand %p1963_p13, %p1960_p12 }
  0x5f   :  { %1968 = shalt.err (!%p1965_p0)
}
  0x60   :  { %s1969_s16 = scalar_lea.vmem %s50_s12, 256  ;;  %p1974_p2 = scmp.lt.s32.totalorder %s50_s12, %s50_s12 }
  0x61   :  { %p1970_p1 = scmp.ne.s32.totalorder %s50_s12, %s1969_s16  ;;  %p1975_p3 = scmp.lt.s32.totalorder %s1969_s16, %s1969_s16 }
  0x63   :  { %p1976_p4 = por %p1975_p3, %p1974_p2 }
  0x65   :  { %p1977_p5 = pnand %p1976_p4, %p1970_p1 }
  0x67   :  { %1980 = shalt.err (!%p1977_p5)
}
  0x68   :  { %s2091_s0 = smov 64   ;;  %s2092_s30 = smov 4  }
  0x69   :  { %55 = dma.hbm_to_vmem [thread:$0]  %s2548_s2, 256, %s50_s12, [#allocation7], %s2091_s0, %s2091_s0, %s2092_s30  }
  0x6a   :  { %s2093_s20 = smov [#allocation11]   ;;  %s2094_s22 = smov [#allocation14]  }
  0x6b   :  { %s71_s21 = sshll.u32 %s2093_s20, 4  ;;  %s93_s23 = sshll.u32 %s2094_s22, 4  ;;  %s72_s21 = int_to_ptr.vmem [resolvable:$true] %s71_s21  ;;  %s2241_s23 = int_to_ptr.vmem [resolvable:$true] %s93_s23 }
  0x6c   :  { %s1981_s24 = scalar_lea.hbm %s2550_s4, 256 }
  0x6d   :  { %p1982_p6 = scmp.ne.s32.totalorder %s2550_s4, %s1981_s24  ;;  %p1985_p7 = scmp.lt.u32.totalorder %s1981_s24, %s2550_s4 }
  0x6f   :  { %p1987_p8 = pnand %p1985_p7, %p1982_p6 }
  0x71   :  { %1990 = shalt.err (!%p1987_p8)
}
  0x72   :  { %s1991_s2 = scalar_lea.vmem %s72_s21, 256  ;;  %p1996_p10 = scmp.lt.s32.totalorder %s72_s21, %s72_s21 }
  0x73   :  { %p1992_p9 = scmp.ne.s32.totalorder %s72_s21, %s1991_s2  ;;  %p1997_p11 = scmp.lt.s32.totalorder %s1991_s2, %s1991_s2 }
  0x75   :  { %p1998_p12 = por %p1997_p11, %p1996_p10 }
  0x77   :  { %p1999_p13 = pnand %p1998_p12, %p1992_p9 }
  0x79   :  { %2002 = shalt.err (!%p1999_p13)
}
  0x7a   :  { %77 = dma.hbm_to_vmem [thread:$0]  %s2550_s4, 256, %s72_s21, [#allocation10], %s2091_s0, %s2091_s0, %s2092_s30  }
  0x7b   :  { %s2003_s15 = scalar_lea.hbm %s2552_s6, 256 }
  0x7c   :  { %p2004_p0 = scmp.ne.s32.totalorder %s2552_s6, %s2003_s15  ;;  %p2007_p1 = scmp.lt.u32.totalorder %s2003_s15, %s2552_s6 }
  0x7e   :  { %p2009_p2 = pnand %p2007_p1, %p2004_p0 }
  0x80   :  { %2012 = shalt.err (!%p2009_p2)
}
  0x81   :  { %s2013_s18 = scalar_lea.vmem %s2241_s23, 256  ;;  %p2018_p4 = scmp.lt.s32.totalorder %s2241_s23, %s2241_s23 }
  0x82   :  { %p2014_p3 = scmp.ne.s32.totalorder %s2241_s23, %s2013_s18  ;;  %p2019_p5 = scmp.lt.s32.totalorder %s2013_s18, %s2013_s18 }
  0x84   :  { %p2020_p6 = por %p2019_p5, %p2018_p4 }
  0x86   :  { %p2021_p7 = pnand %p2020_p6, %p2014_p3 }
  0x88   :  { %2024 = shalt.err (!%p2021_p7)
}
  0x89   :  { %99 = dma.hbm_to_vmem [thread:$0]  %s2552_s6, 256, %s2241_s23, [#allocation13], %s2091_s0, %s2091_s0, %s2092_s30  }
  0x8a   :  { %s2095_s21 = smov [#allocation17]   ;;  %s2025_s24 = scalar_lea.hbm %s2554_s8, 1024 }
  0x8b   :  { %s115_s22 = sshll.u32 %s2095_s21, 4  ;;  %p2026_p8 = scmp.ne.s32.totalorder %s2554_s8, %s2025_s24  ;;  %s116_s22 = int_to_ptr.vmem [resolvable:$true] %s115_s22 }
  0x8c   :  { %p2029_p9 = scmp.lt.u32.totalorder %s2025_s24, %s2554_s8 }
  0x8e   :  { %p2031_p10 = pnand %p2029_p9, %p2026_p8 }
  0x90   :  { %2034 = shalt.err (!%p2031_p10)
}
  0x91   :  { %s2035_s2 = scalar_lea.vmem %s116_s22, 1024  ;;  %p2040_p12 = scmp.lt.s32.totalorder %s116_s22, %s116_s22 }
  0x92   :  { %p2036_p11 = scmp.ne.s32.totalorder %s116_s22, %s2035_s2  ;;  %p2041_p13 = scmp.lt.s32.totalorder %s2035_s2, %s2035_s2 }
  0x94   :  { %p2042_p0 = por %p2041_p13, %p2040_p12 }
  0x96   :  { %p2043_p1 = pnand %p2042_p0, %p2036_p11 }
  0x98   :  { %2046 = shalt.err (!%p2043_p1)
}
  0x99   :  { %121 = dma.hbm_to_vmem [thread:$0]  %s2554_s8, 1024, %s116_s22, [#allocation16], %s2091_s0, %s2091_s0, %s2092_s30  }
  0x9a   :  { %2069 = dma.done.wait [#allocation4], 256  }
  0x9b   :  { %2070 = vsyncadd [#allocation4], 4294967040 }
  0x9c   :  { %2071 = dma.done.wait [#allocation7], 288  }
  0x9d   :  { %2072 = vsyncadd [#allocation7], 4294967008 }
  0x9e   :  { %2073 = dma.done.wait [#allocation10], 272  }
  0x9f   :  { %2074 = vsyncadd [#allocation10], 4294967024 }
  0xa0   :  { %2075 = dma.done.wait [#allocation13], 320  }
  0xa1   :  { %2076 = vsyncadd [#allocation13], 4294966976 }
  0xa2   :  { %2077 = dma.done.wait [#allocation16], 1040  }
  0xa3   :  { %2078 = vsyncadd [#allocation16], 4294966256  ;;  %v2096_v0 = vmov 0.0   ;;  %vm2097_vm0 = vmmov 0   ;;  %v1791_v1 = vld [vmem:[#allocation8] sm:$0xff]   ;;  %v1792_v2 = vld [vmem:[#allocation8 + $0x8] sm:$0xff]   ;;  %v229_v41 = vlaneseq }
  0xa4   :  { %1621 = vmatprep.subr.bf16.mxu0 %v2096_v0  ;;  %1625 = vmatprep.mubr.msk.bf16.mxu0 %vm2097_vm0, %v2096_v0  ;;  %v2299_v3 = vld [vmem:[#allocation3] sm:$0xff]  ;;  %v2301_v4 = vld [vmem:[#allocation3 + $0x8] sm:$0xff]  ;;  %vm176_vm1 = vcmask 261120   ;;  %s2098_s8 = smov 96   ;;  %s2099_s30 = smov 120   ;;  %vm237_vm2 = vcmask 64512  }
  0xa5   :  { %1641 = vmatprep.subr.bf16.mxu1 %v2096_v0  ;;  %1643 = vmatprep.mubr.msk.bf16.mxu1 %vm2097_vm0, %v2096_v0  ;;  %v152_v5 = vpack.c.bf16 %v2301_v4, %v2299_v3  ;;  %v1532_v6 = vld [vmem:[#allocation9] ss:$0 sm:$0xff]  ;;  %s2100_s12 = smov 88   ;;  %s2101_s1 = smov 80   ;;  %v225_v42 = vld [vmem:[#allocation6] sm:$0x1] }
  0xa6   :  { %1622 = vmatpush3.bf16.msra.mxu0 %v1791_v1  ;;  %s2102_s10 = smov 112   ;;  %s2103_s14 = smov 72   ;;  %v230_v43 = vshrl.u32 %v229_v41, 7  ;;  %vm226_vm3 = vcmp.gt.f32.partialorder %v225_v42, 0.0  ;;  %v2105_v45 = vmov -1e+09  }
  0xa7   :  { %1623 = vmatprep.subr.bf16.mxu0 %v2096_v0  ;;  %s2104_s15 = smov 104   ;;  %v227_v46 = vsel %vm226_vm3, 0.0, %v2105_v45  ;;  %s2106_s5 = smov 56   ;;  %vm301_vm5 = vcmask 1043456   ;;  %vm461_vm6 = vcmask 130112   ;;  %vm577_vm7 = vcmask 195712  }
  0xa8   :  { %v231_v44 = vsub.s32 0, %v230_v43  ;;  %s2107_s26 = smov 48   ;;  %s2108_s16 = smov 40   ;;  %vm693_vm8 = vcmask 261312  }
  0xaa   :  { %1624 = vmatpush3.bf16.msra.mxu0 %v1792_v2  ;;  %v232_v47 = vrot.slane %v227_v46, %v231_v44 }
  0xab   :  { %1629 = vmatprep.subr.bf16.mxu0 %v2096_v0 }
  0xad   :  { %1626 = vmatmul.mubr.msk.bf16.vlgmr.msra.gmra.mrb[0].mxu0 %vm176_vm1, %v152_v5  ;;  %v696_v5 = vld [vmem:[#allocation6 + $0x1] sm:$0x1] }
  0xae   :  { %1631 = vmatprep.mubr.msk.bf16.mxu0 %vm2097_vm0, %v2096_v0  ;;  %vm697_vm4 = vcmp.gt.f32.partialorder %v696_v5, 0.0 }
 0x180   :  { %v214_v7 = vpop.f32.mrb[0].mxu0 }
 0x181   :  { %v215_v8 = vadd.f32 %v1532_v6, %v214_v7  ;;  %v1627_v9 = vpop.f32.mrb[1].mxu0 }
 0x182   :  { %v217_v10 = vpop.f32.mrb[2].mxu0 }
 0x183   :  { %v218_v11 = vadd.f32 %v1532_v6, %v217_v10  ;;  %v1628_v12 = vpop.f32.mrb[3].mxu0  ;;  %v221_v13 = vmul.f32 0.35355338, %v215_v8  ;;  %v698_v10 = vsel %vm697_vm4, 0.0, %v2105_v45 }
 0x185   :  { %v222_v14 = vmul.f32 0.35355338, %v218_v11  ;;  %v2310_v15 = vpack.c.bf16 %v218_v11, %v215_v8 }
 0x187   :  { %v223_v16 = vpack.c.bf16 %v222_v14, %v221_v13  ;;  %235 = vrot.lane.b32.xlu0 %v2310_v15, %s2098_s8  ;;  %v2317_v17 = vrot.slane %v2310_v15, 4  ;;  %v703_v13 = vrot.slane %v698_v10, %v231_v44 }
 0x189   :  { %347 = vrot.lane.b32.xlu1 %v223_v16, %s2099_s30  ;;  %v705_v18 = vrot.slane %v223_v16, 4 }
 0x18b   :  { %349 = vrot.lane.b32.xlu0 %v2310_v15, %s2100_s12 }
 0x18d   :  { %465 = vrot.lane.b32.xlu1 %v2310_v15, %s2101_s1 }
 0x18f   :  { %463 = vrot.lane.b32.xlu0 %v223_v16, %s2102_s10 }
 0x191   :  { %581 = vrot.lane.b32.xlu1 %v2310_v15, %s2103_s14 }
 0x193   :  { %579 = vrot.lane.b32.xlu0 %v223_v16, %s2104_s15 }
 0x195   :  { %707 = vrot.lane.b32.xlu1 %v2317_v17, %s2098_s8 }
 0x197   :  { %818 = vrot.lane.b32.xlu0 %v2317_v17, %s2100_s12 }
 0x199   :  { %816 = vrot.lane.b32.xlu1 %v705_v18, %s2099_s30 }
 0x19b   :  { %933 = vrot.lane.b32.xlu0 %v2317_v17, %s2101_s1 }
 0x19d   :  { %931 = vrot.lane.b32.xlu1 %v705_v18, %s2102_s10 }
 0x19f   :  { %1048 = vrot.lane.b32.xlu0 %v2317_v17, %s2103_s14 }
 0x1a1   :  { %1046 = vrot.lane.b32.xlu1 %v705_v18, %s2104_s15 }
 0x1f9   :  { %v236_v19 = vpop.permute.xlu0 %235 }
 0x1fa   :  { %v242_v20 = vsel %vm237_vm2, %v236_v19, 0 }
 0x1fb   :  { %1630 = vmatpush3.bf16.xpose.msra.mxu0 %v242_v20  ;;  %v348_v21 = vpop.permute.xlu1 %347 }
 0x1fc   :  { %1635 = vmatprep.subr.bf16.mxu0 %v2096_v0 }
 0x1fd   :  { %v350_v22 = vpop.permute.xlu0 %349 }
 0x1fe   :  { %v355_v23 = vsel %vm237_vm2, %v350_v22, 0 }
 0x1ff   :  { %1642 = vmatpush3.bf16.xpose.msra.mxu1 %v355_v23  ;;  %v466_v24 = vpop.permute.xlu1 %465 }
 0x200   :  { %1653 = vmatprep.subr.bf16.mxu1 %v2096_v0  ;;  %v471_v25 = vsel %vm237_vm2, %v466_v24, 0 }
 0x201   :  { %v464_v27 = vpop.permute.xlu0 %463 }
 0x202   :  { %1632 = vmatmul.mubr.msk.bf16.vlgmr.msra.gmra.mrb[4].mxu0 %vm237_vm2, %v223_v16 }
 0x203   :  { %1637 = vmatprep.mubr.msk.bf16.mxu0 %vm2097_vm0, %v2096_v0  ;;  %v582_v26 = vpop.permute.xlu1 %581 }
 0x204   :  { %v587_v28 = vsel %vm237_vm2, %v582_v26, 0 }
 0x205   :  { %v580_v30 = vpop.permute.xlu0 %579 }
 0x206   :  { %1644 = vmatmul.mubr.msk.bf16.vlgmr.msra.gmra.mrb[0].mxu1 %vm237_vm2, %v348_v21 }
 0x207   :  { %1654 = vmatpush3.bf16.xpose.msra.mxu1 %v471_v25  ;;  %1655 = vmatprep.mubr.msk.bf16.mxu1 %vm2097_vm0, %v2096_v0  ;;  %v708_v29 = vpop.permute.xlu1 %707 }
 0x208   :  { %1665 = vmatprep.subr.bf16.mxu1 %v2096_v0  ;;  %v713_v31 = vsel %vm237_vm2, %v708_v29, 0 }
 0x209   :  { %v819_v32 = vpop.permute.xlu0 %818 }
 0x20a   :  { %v824_v33 = vsel %vm237_vm2, %v819_v32, 0 }
 0x20b   :  { %v817_v35 = vpop.permute.xlu1 %816 }
 0x20d   :  { %v934_v34 = vpop.permute.xlu0 %933 }
 0x20e   :  { %1656 = vmatmul.mubr.msk.bf16.vlgmr.msra.gmra.mrb[4].mxu1 %vm237_vm2, %v464_v27  ;;  %v939_v36 = vsel %vm237_vm2, %v934_v34, 0 }
 0x20f   :  { %1666 = vmatpush3.bf16.xpose.msra.mxu1 %v587_v28  ;;  %1667 = vmatprep.mubr.msk.bf16.mxu1 %vm2097_vm0, %v2096_v0  ;;  %v932_v38 = vpop.permute.xlu1 %931 }
 0x210   :  { %1677 = vmatprep.subr.bf16.mxu1 %v2096_v0 }
 0x211   :  { %v1049_v37 = vpop.permute.xlu0 %1048 }
 0x212   :  { %v1054_v39 = vsel %vm237_vm2, %v1049_v37, 0 }
 0x213   :  { %v1047_v40 = vpop.permute.xlu1 %1046 }
 0x216   :  { %1668 = vmatmul.mubr.msk.bf16.vlgmr.msra.gmra.mrb[8].mxu1 %vm237_vm2, %v580_v30 }
 0x217   :  { %1678 = vmatpush3.bf16.xpose.msra.mxu1 %v713_v31  ;;  %1679 = vmatprep.mubr.msk.bf16.mxu1 %vm2097_vm0, %v2096_v0 }
 0x218   :  { %1689 = vmatprep.subr.bf16.mxu1 %v2096_v0 }
 0x21e   :  { %1680 = vmatmul.mubr.msk.bf16.vlgmr.msra.gmra.mrb[12].mxu1 %vm237_vm2, %v705_v18 }
 0x21f   :  { %1690 = vmatpush3.bf16.xpose.msra.mxu1 %v824_v33  ;;  %1691 = vmatprep.mubr.msk.bf16.mxu1 %vm2097_vm0, %v2096_v0 }
 0x220   :  { %1701 = vmatprep.subr.bf16.mxu1 %v2096_v0 }
 0x226   :  { %1692 = vmatmul.mubr.msk.bf16.vlgmr.msra.gmra.mrb[16].mxu1 %vm237_vm2, %v817_v35 }
 0x227   :  { %1702 = vmatpush3.bf16.xpose.msra.mxu1 %v939_v36  ;;  %1703 = vmatprep.mubr.msk.bf16.mxu1 %vm2097_vm0, %v2096_v0 }
 0x228   :  { %1713 = vmatprep.subr.bf16.mxu1 %v2096_v0 }
 0x22e   :  { %1704 = vmatmul.mubr.msk.bf16.vlgmr.msra.gmra.mrb[20].mxu1 %vm237_vm2, %v932_v38 }
 0x22f   :  { %1714 = vmatpush3.bf16.xpose.msra.mxu1 %v1054_v39  ;;  %1715 = vmatprep.mubr.msk.bf16.mxu1 %vm2097_vm0, %v2096_v0 }
 0x230   :  { %1725 = vmatprep.subr.bf16.mxu1 %v2096_v0 }
 0x236   :  { %1716 = vmatmul.mubr.msk.bf16.vlgmr.msra.gmra.mrb[24].mxu1 %vm237_vm2, %v1047_v40 }
 0x237   :  { %1729 = vmatprep.mubr.msk.bf16.mxu1 %vm2097_vm0, %v2096_v0 }
 0x2d5   :  { %v278_v48 = vpop.f32.mrb[4].mxu0 }
 0x2d6   :  { %v2363_v49 = vadd.f32 %v278_v48, %v232_v47  ;;  %v1633_v50 = vpop.f32.mrb[5].mxu0 }
 0x2d7   :  { %v281_v51 = vpop.f32.mrb[6].mxu0 }
 0x2d8   :  { %v1634_v52 = vpop.f32.mrb[7].mxu0  ;;  %v284_v53 = vsel %vm237_vm2, %v2363_v49, -inf }
 0x2d9   :  { %v391_v54 = vpop.f32.mrb[0].mxu1  ;;  %285 = vmax.xlane.f32.xlu0 %v284_v53 }
 0x2da   :  { %v392_v55 = vadd.f32 %v391_v54, %v232_v47  ;;  %v1645_v56 = vpop.f32.mrb[1].mxu1 }
 0x2db   :  { %v394_v57 = vpop.f32.mrb[2].mxu1 }
 0x2dc   :  { %v1646_v58 = vpop.f32.mrb[3].mxu1  ;;  %v397_v59 = vsel %vm237_vm2, %v392_v55, -inf }
 0x2dd   :  { %398 = vmax.xlane.f32.xlu1 %v397_v59 }
 0x2e1   :  { %v507_v60 = vpop.f32.mrb[4].mxu1 }
 0x2e2   :  { %v508_v61 = vadd.f32 %v507_v60, %v232_v47  ;;  %v1657_v62 = vpop.f32.mrb[5].mxu1 }
 0x2e3   :  { %v510_v63 = vpop.f32.mrb[6].mxu1 }
 0x2e4   :  { %v1658_v1 = vpop.f32.mrb[7].mxu1  ;;  %v513_v2 = vsel %vm237_vm2, %v508_v61, -inf }
 0x2e5   :  { %514 = vmax.xlane.f32.xlu0 %v513_v2 }
 0x2e9   :  { %v623_v6 = vpop.f32.mrb[8].mxu1 }
 0x2ea   :  { %v2369_v7 = vadd.f32 %v623_v6, %v232_v47  ;;  %v1669_v8 = vpop.f32.mrb[9].mxu1 }
 0x2eb   :  { %v626_v9 = vpop.f32.mrb[10].mxu1 }
 0x2ec   :  { %v1670_v11 = vpop.f32.mrb[11].mxu1  ;;  %v629_v12 = vsel %vm237_vm2, %v2369_v7, -inf }
 0x2ed   :  { %630 = vmax.xlane.f32.xlu0 %v629_v12 }
 0x2f1   :  { %v749_v14 = vpop.f32.mrb[12].mxu1 }
 0x2f2   :  { %v2373_v16 = vadd.f32 %v749_v14, %v703_v13  ;;  %v1681_v18 = vpop.f32.mrb[13].mxu1 }
 0x2f3   :  { %v752_v19 = vpop.f32.mrb[14].mxu1 }
 0x2f4   :  { %v1682_v20 = vpop.f32.mrb[15].mxu1  ;;  %v755_v21 = vsel %vm237_vm2, %v2373_v16, -inf }
 0x2f5   :  { %756 = vmax.xlane.f32.xlu1 %v755_v21 }
 0x2f9   :  { %v860_v22 = vpop.f32.mrb[16].mxu1 }
 0x2fa   :  { %v2377_v23 = vadd.f32 %v860_v22, %v703_v13  ;;  %v1693_v24 = vpop.f32.mrb[17].mxu1 }
 0x2fb   :  { %v863_v25 = vpop.f32.mrb[18].mxu1 }
 0x2fc   :  { %v1694_v26 = vpop.f32.mrb[19].mxu1  ;;  %v866_v27 = vsel %vm237_vm2, %v2377_v23, -inf }
 0x2fd   :  { %867 = vmax.xlane.f32.xlu0 %v866_v27 }
 0x301   :  { %v975_v28 = vpop.f32.mrb[20].mxu1 }
 0x302   :  { %v976_v29 = vadd.f32 %v975_v28, %v703_v13  ;;  %v1705_v30 = vpop.f32.mrb[21].mxu1 }
 0x303   :  { %v978_v31 = vpop.f32.mrb[22].mxu1 }
 0x304   :  { %v1706_v32 = vpop.f32.mrb[23].mxu1  ;;  %v981_v33 = vsel %vm237_vm2, %v976_v29, -inf }
 0x305   :  { %982 = vmax.xlane.f32.xlu1 %v981_v33 }
 0x309   :  { %v1090_v34 = vpop.f32.mrb[24].mxu1 }
 0x30a   :  { %v1717_v35 = vpop.f32.mrb[25].mxu1  ;;  %v2386_v38 = vadd.f32 %v1090_v34, %v703_v13 }
 0x30b   :  { %v1093_v36 = vpop.f32.mrb[26].mxu1 }
 0x30c   :  { %v1718_v37 = vpop.f32.mrb[27].mxu1  ;;  %v1096_v39 = vsel %vm237_vm2, %v2386_v38, -inf }
 0x313   :  { %409 = vrot.lane.b32.xlu0 %v2310_v15, %s2106_s5 }
 0x316   :  { %296 = vrot.lane.b32.xlu1 %v2310_v15, %s2091_s0 }
 0x332   :  { %1097 = vmax.xlane.f32.xlu0 %v1096_v39 }
 0x366   :  { %v286_v40 = vpop.xlane.xlu0 %285 }
 0x367   :  { %v287_v41 = vsub.f32 %v2363_v49, %v286_v40 }
 0x369   :  { %v288_v42 = vmul.f32 1.442695, %v287_v41 }
 0x36a   :  { %v399_v43 = vpop.xlane.xlu1 %398 }
 0x36b   :  { %1805 = vpow2.f32 %v288_v42  ;;  %v400_v44 = vsub.f32 %v392_v55, %v399_v43 }
 0x36d   :  { %v401_v45 = vmul.f32 1.442695, %v400_v44 }
 0x36f   :  { %1807 = vpow2.f32 %v401_v45 }
 0x372   :  { %v515_v46 = vpop.xlane.xlu0 %514 }
 0x373   :  { %v516_v47 = vsub.f32 %v508_v61, %v515_v46 }
 0x375   :  { %v2391_v48 = vpop.eup %1805  ;;  %v517_v50 = vmul.f32 1.442695, %v516_v47 }
 0x376   :  { %v290_v51 = vsel %vm237_vm2, %v2391_v48, 0.0 }
 0x377   :  { %1809 = vpow2.f32 %v517_v50  ;;  %291 = vadd.xlane.f32.xlu1 %v290_v51 }
 0x379   :  { %v2395_v52 = vpop.eup %1807 }
 0x37a   :  { %v403_v49 = vsel %vm237_vm2, %v2395_v52, 0.0  ;;  %v631_v58 = vpop.xlane.xlu0 %630 }
 0x37b   :  { %404 = vadd.xlane.f32.xlu0 %v403_v49  ;;  %v632_v60 = vsub.f32 %v2369_v7, %v631_v58 }
 0x37d   :  { %v633_v61 = vmul.f32 1.442695, %v632_v60 }
 0x37f   :  { %1811 = vpow2.f32 %v633_v61 }
 0x381   :  { %v2399_v53 = vpop.eup %1809 }
 0x382   :  { %v519_v54 = vsel %vm237_vm2, %v2399_v53, 0.0  ;;  %v757_v55 = vpop.xlane.xlu1 %756 }
 0x383   :  { %520 = vadd.xlane.f32.xlu1 %v519_v54  ;;  %v758_v62 = vsub.f32 %v2373_v16, %v757_v55 }
 0x385   :  { %v759_v2 = vmul.f32 1.442695, %v758_v62 }
 0x387   :  { %1813 = vpow2.f32 %v759_v2 }
 0x389   :  { %v1812_v8 = vpop.eup %1811 }
 0x38a   :  { %v868_v63 = vpop.xlane.xlu0 %867  ;;  %v635_v9 = vsel %vm237_vm2, %v1812_v8, 0.0 }
 0x38b   :  { %v869_v1 = vsub.f32 %v2377_v23, %v868_v63 }
 0x38e   :  { %v410_v16 = vpop.permute.xlu0 %409 }
 0x38f   :  { %v415_v30 = vsel %vm301_vm5, %v410_v16, 0 }
 0x391   :  { %525 = vrot.lane.b32.xlu0 %v2310_v15, %s2107_s26  ;;  %v2413_v10 = vpop.eup %1813 }
 0x392   :  { %v983_v56 = vpop.xlane.xlu1 %982  ;;  %v761_v11 = vsel %vm237_vm2, %v2413_v10, 0.0 }
 0x393   :  { %v984_v5 = vsub.f32 %v976_v29, %v983_v56 }
 0x394   :  { %641 = vrot.lane.b32.xlu1 %v2310_v15, %s2108_s16  ;;  %v870_v15 = vmul.f32 1.442695, %v869_v1 }
 0x395   :  { %v985_v6 = vmul.f32 1.442695, %v984_v5 }
 0x396   :  { %v297_v57 = vpop.permute.xlu1 %296  ;;  %1815 = vpow2.f32 %v870_v15 }
 0x397   :  { %v303_v59 = vsel %vm301_vm5, %v297_v57, 0  ;;  %1817 = vpow2.f32 %v985_v6 }
 0x398   :  { %1636 = vmatpush3.bf16.msra.mxu0 %v303_v59 }
 0x399   :  { %1647 = vmatprep.subr.bf16.mxu0 %v2096_v0 }
 0x3a0   :  { %v2415_v7 = vpop.eup %1815 }
 0x3a1   :  { %v2419_v12 = vpop.eup %1817  ;;  %v872_v14 = vsel %vm237_vm2, %v2415_v7, 0.0 }
 0x3a2   :  { %v987_v13 = vsel %vm237_vm2, %v2419_v12, 0.0 }
 0x3b0   :  { %636 = vadd.xlane.f32.xlu0 %v635_v9 }
 0x3b4   :  { %762 = vadd.xlane.f32.xlu0 %v761_v11 }
 0x3b8   :  { %988 = vadd.xlane.f32.xlu0 %v987_v13  ;;  %873 = vadd.xlane.f32.xlu1 %v872_v14 }
 0x3bf   :  { %v1098_v18 = vpop.xlane.xlu0 %1097 }
 0x3c0   :  { %v1099_v19 = vsub.f32 %v2386_v38, %v1098_v18 }
 0x3c2   :  { %v1100_v20 = vmul.f32 1.442695, %v1099_v19 }
 0x3c4   :  { %1819 = vpow2.f32 %v1100_v20 }
 0x3c9   :  { %878 = vrot.lane.b32.xlu1 %v2317_v17, %s2106_s5 }
 0x3cd   :  { %993 = vrot.lane.b32.xlu1 %v2317_v17, %s2107_s26 }
 0x3ce   :  { %v2430_v21 = vpop.eup %1819 }
 0x3cf   :  { %v1102_v22 = vsel %vm237_vm2, %v2430_v21, 0.0 }
 0x3d0   :  { %1103 = vadd.xlane.f32.xlu0 %v1102_v22 }
 0x3d1   :  { %1108 = vrot.lane.b32.xlu1 %v2317_v17, %s2108_s16 }
 0x3e6   :  { %767 = vrot.lane.b32.xlu0 %v2317_v17, %s2091_s0  ;;  %s2109_s0 = smov 24  }
 0x404   :  { %v292_v23 = vpop.xlane.xlu1 %291 }
 0x405   :  { %1821 = vrcp.f32 %v292_v23 }
 0x408   :  { %v405_v24 = vpop.xlane.xlu0 %404 }
 0x409   :  { %1823 = vrcp.f32 %v405_v24 }
 0x40c   :  { %v526_v31 = vpop.permute.xlu0 %525 }
 0x40d   :  { %v531_v34 = vsel %vm301_vm5, %v526_v31, 0  ;;  %v1794_v31 = vld [vmem:[#allocation11 + $0x8] sm:$0xff]  }
 0x40f   :  { %v1822_v25 = vpop.eup %1821 }
 0x410   :  { %v294_v26 = vmul.f32 %v1822_v25, %v2391_v48  ;;  %v521_v27 = vpop.xlane.xlu1 %520 }
 0x411   :  { %1825 = vrcp.f32 %v521_v27 }
 0x412   :  { %v295_v28 = vpack.c.bf16 %v294_v26, %v294_v26 }
 0x413   :  { %v1824_v29 = vpop.eup %1823 }
 0x414   :  { %1638 = vmatmul.mubr.msk.bf16.vlgmr.msra.gmra.mrb[8].mxu0 %vm237_vm2, %v295_v28  ;;  %v407_v17 = vmul.f32 %v1824_v29, %v2395_v52  ;;  %v642_v36 = vpop.permute.xlu1 %641 }
 0x415   :  { %1648 = vmatpush3.bf16.msra.mxu0 %v415_v30  ;;  %1649 = vmatprep.mubr.msk.bf16.mxu0 %vm2097_vm0, %v2096_v0  ;;  %v647_v38 = vsel %vm301_vm5, %v642_v36, 0 }
 0x416   :  { %1659 = vmatprep.subr.bf16.mxu0 %v2096_v0  ;;  %v408_v32 = vpack.c.bf16 %v407_v17, %v407_v17  ;;  %v1793_v17 = vld [vmem:[#allocation11] sm:$0xff]  }
 0x417   :  { %1726 = vmatpush3.bf16.msra.mxu1 %v1793_v17  ;;  %v1797_v17 = vld [vmem:[#allocation17] sm:$0xff]  }
 0x418   :  { %1727 = vmatprep.subr.bf16.mxu1 %v2096_v0 }
 0x41b   :  { %v1826_v33 = vpop.eup %1825  ;;  %1728 = vmatpush3.bf16.msra.mxu1 %v1794_v31  ;;  %v1798_v31 = vld [vmem:[#allocation17 + $0x8] sm:$0xff]  }
 0x41c   :  { %1650 = vmatmul.mubr.msk.bf16.vlgmr.msra.gmra.mrb[12].mxu0 %vm237_vm2, %v408_v32  ;;  %v523_v35 = vmul.f32 %v1826_v33, %v2399_v53  ;;  %1741 = vmatprep.subr.bf16.mxu1 %v2096_v0 }
 0x41d   :  { %1660 = vmatpush3.bf16.msra.mxu0 %v531_v34  ;;  %1661 = vmatprep.mubr.msk.bf16.mxu0 %vm2097_vm0, %v2096_v0 }
 0x41e   :  { %1671 = vmatprep.subr.bf16.mxu0 %v2096_v0  ;;  %v524_v37 = vpack.c.bf16 %v523_v35, %v523_v35 }
 0x424   :  { %1662 = vmatmul.mubr.msk.bf16.vlgmr.msra.gmra.mrb[16].mxu0 %vm237_vm2, %v524_v37 }
 0x425   :  { %1672 = vmatpush3.bf16.msra.mxu0 %v647_v38  ;;  %1673 = vmatprep.mubr.msk.bf16.mxu0 %vm2097_vm0, %v2096_v0 }
 0x426   :  { %1683 = vmatprep.subr.bf16.mxu0 %v2096_v0 }
 0x43d   :  { %v637_v39 = vpop.xlane.xlu0 %636 }
 0x43e   :  { %1827 = vrcp.f32 %v637_v39 }
 0x441   :  { %v763_v43 = vpop.xlane.xlu0 %762 }
 0x442   :  { %1829 = vrcp.f32 %v763_v43 }
 0x445   :  { %v874_v44 = vpop.xlane.xlu1 %873  ;;  %v989_v45 = vpop.xlane.xlu0 %988 }
 0x446   :  { %1831 = vrcp.f32 %v874_v44 }
 0x447   :  { %1833 = vrcp.f32 %v989_v45 }
 0x448   :  { %v1828_v40 = vpop.eup %1827 }
 0x449   :  { %v639_v41 = vmul.f32 %v1828_v40, %v1812_v8  ;;  %v879_v52 = vpop.permute.xlu1 %878 }
 0x44a   :  { %v884_v54 = vsel %vm301_vm5, %v879_v52, 0 }
 0x44b   :  { %v640_v42 = vpack.c.bf16 %v639_v41, %v639_v41 }
 0x44c   :  { %v1830_v46 = vpop.eup %1829 }
 0x44d   :  { %1674 = vmatmul.mubr.msk.bf16.vlgmr.msra.gmra.mrb[20].mxu0 %vm237_vm2, %v640_v42  ;;  %v765_v48 = vmul.f32 %v1830_v46, %v2413_v10  ;;  %v994_v56 = vpop.permute.xlu1 %993 }
 0x44e   :  { %1685 = vmatprep.mubr.msk.bf16.mxu0 %vm2097_vm0, %v2096_v0  ;;  %v999_v59 = vsel %vm301_vm5, %v994_v56, 0 }
 0x44f   :  { %v766_v49 = vpack.c.bf16 %v765_v48, %v765_v48 }
 0x450   :  { %v1832_v53 = vpop.eup %1831 }
 0x451   :  { %v876_v55 = vmul.f32 %v1832_v53, %v2415_v7  ;;  %v1834_v58 = vpop.eup %1833  ;;  %v1109_v61 = vpop.permute.xlu1 %1108 }
 0x452   :  { %v991_v60 = vmul.f32 %v1834_v58, %v2419_v12  ;;  %v1114_v1 = vsel %vm301_vm5, %v1109_v61, 0 }
 0x453   :  { %v877_v57 = vpack.c.bf16 %v876_v55, %v876_v55 }
 0x454   :  { %v992_v62 = vpack.c.bf16 %v991_v60, %v991_v60 }
 0x45d   :  { %v1104_v47 = vpop.xlane.xlu0 %1103 }
 0x45e   :  { %1835 = vrcp.f32 %v1104_v47 }
 0x461   :  { %v768_v50 = vpop.permute.xlu0 %767 }
 0x462   :  { %v773_v51 = vsel %vm301_vm5, %v768_v50, 0  ;;  %v1552_v50 = vld [vmem:[#allocation12] ss:$0 sm:$0xff] }
 0x463   :  { %1684 = vmatpush3.bf16.msra.mxu0 %v773_v51 }
 0x464   :  { %1695 = vmatprep.subr.bf16.mxu0 %v2096_v0 }
 0x466   :  { %1686 = vmatmul.mubr.msk.bf16.vlgmr.msra.gmra.mrb[24].mxu0 %vm237_vm2, %v766_v49 }
 0x467   :  { %1696 = vmatpush3.bf16.msra.mxu0 %v884_v54  ;;  %1697 = vmatprep.mubr.msk.bf16.mxu0 %vm2097_vm0, %v2096_v0 }
 0x468   :  { %1707 = vmatprep.subr.bf16.mxu0 %v2096_v0  ;;  %v1836_v63 = vpop.eup %1835 }
 0x469   :  { %v1106_v2 = vmul.f32 %v1836_v63, %v2430_v21 }
 0x46b   :  { %v1107_v5 = vpack.c.bf16 %v1106_v2, %v1106_v2 }
 0x46e   :  { %1698 = vmatmul.mubr.msk.bf16.vlgmr.msra.gmra.mrb[28].mxu0 %vm237_vm2, %v877_v57 }
 0x46f   :  { %1708 = vmatpush3.bf16.msra.mxu0 %v999_v59  ;;  %1709 = vmatprep.mubr.msk.bf16.mxu0 %vm2097_vm0, %v2096_v0 }
 0x470   :  { %1719 = vmatprep.subr.bf16.mxu0 %v2096_v0 }
 0x476   :  { %1710 = vmatmul.mubr.msk.bf16.vlgmr.msra.gmra.mrb[32].mxu0 %vm237_vm2, %v992_v62 }
 0x477   :  { %1720 = vmatpush3.bf16.msra.mxu0 %v1114_v1  ;;  %1721 = vmatprep.mubr.msk.bf16.mxu0 %vm2097_vm0, %v2096_v0  ;;  %v1795_v1 = vld [vmem:[#allocation14] sm:$0xff]  }
 0x478   :  { %1733 = vmatprep.subr.bf16.mxu0 %v2096_v0 }
 0x47e   :  { %1722 = vmatmul.mubr.msk.bf16.vlgmr.msra.gmra.mrb[36].mxu0 %vm237_vm2, %v1107_v5 }
 0x47f   :  { %1737 = vmatprep.mubr.msk.bf16.mxu0 %vm2097_vm0, %v2096_v0  ;;  %1734 = vmatpush3.bf16.msra.mxu0 %v1795_v1 }
 0x480   :  { %1735 = vmatprep.subr.bf16.mxu0 %v2096_v0 }
 0x4e7   :  { %v339_v15 = vpop.f32.mrb[8].mxu0 }
 0x4e8   :  { %345 = vst.msk [vmem:[#allocation2] sm:$0xff] %vm237_vm2, %v339_v15  ;;  %v1639_v6 = vpop.f32.mrb[9].mxu0 }
 0x4e9   :  { %v342_v8 = vpop.f32.mrb[10].mxu0 }
 0x4ea   :  { %v1640_v9 = vpop.f32.mrb[11].mxu0 }
 0x4ef   :  { %v451_v10 = vpop.f32.mrb[12].mxu0 }
 0x4f0   :  { %458 = vrot.lane.b32.xlu1 %v451_v10, %s2089_s27  ;;  %v1651_v7 = vpop.f32.mrb[13].mxu0 }
 0x4f1   :  { %v454_v11 = vpop.f32.mrb[14].mxu0 }
 0x4f2   :  { %v1652_v12 = vpop.f32.mrb[15].mxu0 }
 0x4f7   :  { %v567_v13 = vpop.f32.mrb[16].mxu0 }
 0x4f8   :  { %574 = vrot.lane.b32.xlu0 %v567_v13, %s2082_s19  ;;  %v1663_v14 = vpop.f32.mrb[17].mxu0 }
 0x4f9   :  { %v570_v16 = vpop.f32.mrb[18].mxu0 }
 0x4fa   :  { %v1664_v18 = vpop.f32.mrb[19].mxu0 }
 0x520   :  { %v683_v19 = vpop.f32.mrb[20].mxu0 }
 0x521   :  { %690 = vrot.lane.b32.xlu0 %v683_v19, %s2109_s0  ;;  %v1675_v20 = vpop.f32.mrb[21].mxu0 }
 0x522   :  { %v686_v21 = vpop.f32.mrb[22].mxu0 }
 0x523   :  { %v1676_v22 = vpop.f32.mrb[23].mxu0  ;;  %v2501_v21 = vld [vmem:[#allocation12 + $0x1] ss:$0 sm:$0xff] }
 0x539   :  { %v809_v23 = vpop.f32.mrb[24].mxu0 }
 0x53a   :  { %815 = vst.msk [vmem:[#allocation2 + $0x8] sm:$0xff] %vm237_vm2, %v809_v23  ;;  %v1687_v24 = vpop.f32.mrb[25].mxu0 }
 0x53b   :  { %v812_v25 = vpop.f32.mrb[26].mxu0 }
 0x53c   :  { %v1688_v26 = vpop.f32.mrb[27].mxu0 }
 0x53d   :  { %v2504_v26 = vld [vmem:[#allocation12 + $0x2] ss:$0 sm:$0xff] }
 0x541   :  { %v920_v27 = vpop.f32.mrb[28].mxu0 }
 0x542   :  { %927 = vrot.lane.b32.xlu1 %v920_v27, %s2089_s27  ;;  %v1699_v28 = vpop.f32.mrb[29].mxu0 }
 0x543   :  { %v923_v29 = vpop.f32.mrb[30].mxu0 }
 0x544   :  { %v1700_v30 = vpop.f32.mrb[31].mxu0 }
 0x549   :  { %v1035_v32 = vpop.f32.mrb[32].mxu0 }
 0x54a   :  { %1042 = vrot.lane.b32.xlu1 %v1035_v32, %s2082_s19  ;;  %v1711_v33 = vpop.f32.mrb[33].mxu0  ;;  %v1799_v32 = vld [vmem:[#allocation17 + $0x10] sm:$0xff]   ;;  %s2110_s19 = smov [#allocation18]  }
 0x54b   :  { %v1038_v34 = vpop.f32.mrb[34].mxu0  ;;  %v1800_v33 = vld [vmem:[#allocation17 + $0x18] sm:$0xff]   ;;  %s1516_s17 = sshll.u32 %s2110_s19, 4  ;;  %s1517_s17 = int_to_ptr.vmem [resolvable:$true] %s1516_s17 }
 0x54c   :  { %v1712_v35 = vpop.f32.mrb[35].mxu0  ;;  %v1801_v34 = vld [vmem:[#allocation17 + $0x20] sm:$0xff]   ;;  %s2047_s18 = scalar_lea.vmem %s1517_s17, 256  ;;  %p2052_p3 = scmp.lt.s32.totalorder %s1517_s17, %s1517_s17 }
 0x54d   :  { %v1802_v35 = vld [vmem:[#allocation17 + $0x28] sm:$0xff]   ;;  %p2048_p2 = scmp.ne.s32.totalorder %s1517_s17, %s2047_s18  ;;  %p2053_p4 = scmp.lt.s32.totalorder %s2047_s18, %s2047_s18 }
 0x54f   :  { %p2054_p5 = por %p2053_p4, %p2052_p3 }
 0x551   :  { %v1150_v36 = vpop.f32.mrb[36].mxu0  ;;  %p2055_p6 = pnand %p2054_p5, %p2048_p2 }
 0x552   :  { %1157 = vrot.lane.b32.xlu1 %v1150_v36, %s2109_s0  ;;  %v1723_v37 = vpop.f32.mrb[37].mxu0  ;;  %v1803_v36 = vld [vmem:[#allocation17 + $0x30] sm:$0xff]  }
 0x553   :  { %v1153_v38 = vpop.f32.mrb[38].mxu0  ;;  %v1804_v37 = vld [vmem:[#allocation17 + $0x38] sm:$0xff]  }
 0x554   :  { %v1724_v39 = vpop.f32.mrb[39].mxu0  ;;  %v1558_v38 = vld [vmem:[#allocation15] ss:$0 sm:$0xff] }
 0x562   :  { %v459_v40 = vpop.permute.xlu1 %458 }
 0x563   :  { %462 = vst.msk [vmem:[#allocation2] sm:$0xff] %vm461_vm6, %v459_v40 }
 0x56a   :  { %v575_v41 = vpop.permute.xlu0 %574 }
 0x56b   :  { %578 = vst.msk [vmem:[#allocation2] sm:$0xff] %vm577_vm7, %v575_v41 }
 0x593   :  { %v691_v42 = vpop.permute.xlu0 %690 }
 0x594   :  { %694 = vst.msk [vmem:[#allocation2] sm:$0xff] %vm693_vm8, %v691_v42 }
 0x59b   :  { %v1161_v46 = vld [vmem:[#allocation2] sm:$0xff] }
 0x5b4   :  { %v928_v43 = vpop.permute.xlu1 %927 }
 0x5b5   :  { %930 = vst.msk [vmem:[#allocation2 + $0x8] sm:$0xff] %vm461_vm6, %v928_v43 }
 0x5bc   :  { %v1043_v44 = vpop.permute.xlu1 %1042 }
 0x5bd   :  { %1045 = vst.msk [vmem:[#allocation2 + $0x8] sm:$0xff] %vm577_vm7, %v1043_v44 }
 0x5c4   :  { %v1158_v45 = vpop.permute.xlu1 %1157 }
 0x5c5   :  { %1160 = vst.msk [vmem:[#allocation2 + $0x8] sm:$0xff] %vm693_vm8, %v1158_v45 }
 0x5cc   :  { %v1162_v47 = vld [vmem:[#allocation2 + $0x8] sm:$0xff] }
 0x5cd   :  { %v1163_v48 = vpack.c.bf16 %v1162_v47, %v1161_v46 }
 0x5cf   :  { %1730 = vmatmul.mubr.msk.bf16.vlgmr.msra.gmra.mrb[28].mxu1 %vm176_vm1, %v1163_v48 }
 0x5d0   :  { %1757 = vmatprep.mubr.msk.bf16.mxu1 %vm2097_vm0, %v2096_v0  ;;  %1742 = vmatpush3.bf16.msra.mxu1 %v1797_v17 }
 0x5d1   :  { %1743 = vmatprep.subr.bf16.mxu1 %v2096_v0 }
 0x5d4   :  { %1744 = vmatpush3.bf16.msra.mxu1 %v1798_v31 }
 0x5d5   :  { %1745 = vmatprep.subr.bf16.mxu1 %v2096_v0 }
 0x5d8   :  { %1746 = vmatpush3.bf16.msra.mxu1 %v1799_v32 }
 0x5d9   :  { %1747 = vmatprep.subr.bf16.mxu1 %v2096_v0 }
 0x5dc   :  { %1748 = vmatpush3.bf16.msra.mxu1 %v1800_v33 }
 0x5dd   :  { %1749 = vmatprep.subr.bf16.mxu1 %v2096_v0 }
 0x5e0   :  { %1750 = vmatpush3.bf16.msra.mxu1 %v1801_v34 }
 0x5e1   :  { %1751 = vmatprep.subr.bf16.mxu1 %v2096_v0 }
 0x5e4   :  { %1752 = vmatpush3.bf16.msra.mxu1 %v1802_v35 }
 0x5e5   :  { %1753 = vmatprep.subr.bf16.mxu1 %v2096_v0 }
 0x5e8   :  { %1754 = vmatpush3.bf16.msra.mxu1 %v1803_v36 }
 0x5e9   :  { %1755 = vmatprep.subr.bf16.mxu1 %v2096_v0 }
 0x5ec   :  { %1756 = vmatpush3.bf16.msra.mxu1 %v1804_v37 }
 0x6a2   :  { %v1222_v51 = vpop.f32.mrb[28].mxu1 }
 0x6a3   :  { %v1223_v52 = vadd.f32 %v1552_v50, %v1222_v51  ;;  %v1731_v49 = vpop.f32.mrb[29].mxu1 }
 0x6a4   :  { %v1225_v53 = vpop.f32.mrb[30].mxu1 }
 0x6a5   :  { %v1231_v54 = vadd.f32 %v1223_v52, %v2299_v3  ;;  %v1226_v55 = vadd.f32 %v1552_v50, %v1225_v53  ;;  %v1732_v56 = vpop.f32.mrb[31].mxu1  ;;  %v1796_v3 = vld [vmem:[#allocation14 + $0x8] sm:$0xff]  }
 0x6a6   :  { %1736 = vmatpush3.bf16.msra.mxu0 %v1796_v3 }
 0x6a7   :  { %v1232_v57 = vadd.f32 %v1226_v55, %v2301_v4  ;;  %v1233_v58 = vsel %vm176_vm1, %v1231_v54, 0.0  ;;  %v1242_v59 = vmul.f32 %v1231_v54, %v1231_v54 }
 0x6a8   :  { %1234 = vadd.xlane.f32.xlu0 %v1233_v58 }
 0x6a9   :  { %v1236_v60 = vsel %vm176_vm1, %v1232_v57, 0.0  ;;  %v1244_v61 = vsel %vm176_vm1, %v1242_v59, 0.0  ;;  %v1243_v62 = vmul.f32 %v1232_v57, %v1232_v57 }
 0x6aa   :  { %1237 = vadd.xlane.f32.xlu1 %v1236_v60 }
 0x6ab   :  { %v1247_v63 = vsel %vm176_vm1, %v1243_v62, 0.0 }
 0x6ac   :  { %1245 = vadd.xlane.f32.xlu0 %v1244_v61 }
 0x6b0   :  { %1248 = vadd.xlane.f32.xlu0 %v1247_v63  ;;  %v1562_v63 = vld [vmem:[#allocation12 + $0x3] ss:$0 sm:$0xff] }
 0x735   :  { %v1235_v4 = vpop.xlane.xlu0 %1234 }
 0x736   :  { %v1240_v2 = vmul.f32 0.03125, %v1235_v4 }
 0x737   :  { %v1238_v5 = vpop.xlane.xlu1 %1237 }
 0x738   :  { %v1252_v6 = vmul.f32 %v1240_v2, %v1240_v2  ;;  %v1241_v8 = vmul.f32 0.03125, %v1238_v5  ;;  %v1256_v18 = vsub.f32 %v1231_v54, %v1240_v2 }
 0x739   :  { %v1246_v15 = vpop.xlane.xlu0 %1245 }
 0x73a   :  { %v1250_v9 = vmul.f32 0.03125, %v1246_v15  ;;  %v1253_v11 = vmul.f32 %v1241_v8, %v1241_v8  ;;  %v1257_v22 = vsub.f32 %v1232_v57, %v1241_v8 }
 0x73c   :  { %v1254_v10 = vsub.f32 %v1250_v9, %v1252_v6 }
 0x73d   :  { %v1249_v7 = vpop.xlane.xlu0 %1248 }
 0x73e   :  { %v1258_v12 = vadd.f32 1e-05, %v1254_v10  ;;  %v1251_v13 = vmul.f32 0.03125, %v1249_v7 }
 0x740   :  { %1837 = vrsqrt.f32 %v1258_v12  ;;  %v1255_v14 = vsub.f32 %v1251_v13, %v1253_v11 }
 0x742   :  { %v1259_v16 = vadd.f32 1e-05, %v1255_v14 }
 0x744   :  { %1839 = vrsqrt.f32 %v1259_v16 }
 0x74a   :  { %v1838_v19 = vpop.eup %1837 }
 0x74b   :  { %v1262_v20 = vmul.f32 %v1838_v19, %v1256_v18 }
 0x74d   :  { %v1268_v25 = vmul.f32 %v2501_v21, %v1262_v20 }
 0x74e   :  { %v1840_v23 = vpop.eup %1839 }
 0x74f   :  { %v1263_v24 = vmul.f32 %v1840_v23, %v1257_v22  ;;  %v1274_v28 = vadd.f32 %v2504_v26, %v1268_v25 }
 0x751   :  { %v1269_v27 = vmul.f32 %v2501_v21, %v1263_v24 }
 0x753   :  { %v2509_v29 = vadd.f32 %v2504_v26, %v1269_v27 }
 0x755   :  { %v1276_v30 = vpack.c.bf16 %v2509_v29, %v1274_v28 }
 0x757   :  { %1738 = vmatmul.mubr.msk.bf16.vlgmr.msra.gmra.mrb[40].mxu0 %vm176_vm1, %v1276_v30 }
 0x82a   :  { %v1337_v39 = vpop.f32.mrb[40].mxu0 }
 0x82b   :  { %v1338_v40 = vadd.f32 %v1558_v38, %v1337_v39  ;;  %v1739_v41 = vpop.f32.mrb[41].mxu0 }
 0x82c   :  { %v1340_v42 = vpop.f32.mrb[42].mxu0 }
 0x82d   :  { %v1344_v43 = vmul.f32 %v1338_v40, %v1338_v40  ;;  %v1341_v44 = vadd.f32 %v1558_v38, %v1340_v42  ;;  %v1740_v45 = vpop.f32.mrb[43].mxu0 }
 0x82f   :  { %v1346_v46 = vmul.f32 %v1344_v43, %v1338_v40  ;;  %v1345_v47 = vmul.f32 %v1341_v44, %v1341_v44 }
 0x831   :  { %v1348_v48 = vmul.f32 0.044715, %v1346_v46  ;;  %v1347_v50 = vmul.f32 %v1345_v47, %v1341_v44 }
 0x833   :  { %v1350_v51 = vadd.f32 %v1348_v48, %v1338_v40  ;;  %v1349_v52 = vmul.f32 0.044715, %v1347_v50 }
 0x835   :  { %v1352_v49 = vmul.f32 0.7978846, %v1350_v51  ;;  %v1351_v53 = vadd.f32 %v1349_v52, %v1341_v44 }
 0x837   :  { %1841 = vtanh.f32 %v1352_v49  ;;  %v1353_v0 = vmul.f32 0.7978846, %v1351_v53 }
 0x839   :  { %1843 = vtanh.f32 %v1353_v0 }
 0x841   :  { %v1842_v54 = vpop.eup %1841 }
 0x842   :  { %v1356_v55 = vadd.f32 1.0, %v1842_v54 }
 0x843   :  { %v1844_v56 = vpop.eup %1843 }
 0x844   :  { %v1358_v57 = vmul.f32 0.5, %v1356_v55  ;;  %v1357_v58 = vadd.f32 1.0, %v1844_v56 }
 0x846   :  { %v1359_v59 = vmul.f32 0.5, %v1357_v58  ;;  %v1360_v60 = vmul.f32 %v1358_v57, %v1338_v40 }
 0x848   :  { %v1361_v61 = vmul.f32 %v1359_v59, %v1341_v44 }
 0x84a   :  { %v1362_v62 = vpack.c.bf16 %v1361_v61, %v1360_v60 }
 0x84c   :  { %1758 = vmatmul.mubr.bf16.vlgmr.msra.gmra.mrb[32].mxu1 %v1362_v62 }
 0x91f   :  { %v1466_v1 = vpop.f32.mrb[32].mxu1 }
 0x920   :  { %v1467_v3 = vadd.f32 %v1562_v63, %v1466_v1  ;;  %v1759_v4 = vpop.f32.mrb[33].mxu1 }
 0x921   :  { %v1469_v2 = vpop.f32.mrb[34].mxu1 }
 0x922   :  { %v1473_v5 = vadd.f32 %v1467_v3, %v1274_v28  ;;  %v1470_v15 = vadd.f32 %v1562_v63, %v1469_v2  ;;  %v1760_v6 = vpop.f32.mrb[35].mxu1 }
 0x924   :  { %v1474_v8 = vadd.f32 %v1470_v15, %v2509_v29  ;;  %v1475_v9 = vsel %vm176_vm1, %v1473_v5, 0.0  ;;  %v1483_v10 = vmul.f32 %v1473_v5, %v1473_v5 }
 0x925   :  { %1476 = vadd.xlane.f32.xlu1 %v1475_v9 }
 0x926   :  { %v1478_v7 = vsel %vm176_vm1, %v1474_v8, 0.0  ;;  %v1484_v11 = vmul.f32 %v1474_v8, %v1474_v8  ;;  %v1485_v12 = vsel %vm176_vm1, %v1483_v10, 0.0 }
 0x927   :  { %1479 = vadd.xlane.f32.xlu0 %v1478_v7 }
 0x928   :  { %v1488_v13 = vsel %vm176_vm1, %v1484_v11, 0.0 }
 0x929   :  { %1486 = vadd.xlane.f32.xlu1 %v1485_v12 }
 0x92b   :  { %1489 = vadd.xlane.f32.xlu0 %v1488_v13 }
 0x9b2   :  { %v1477_v14 = vpop.xlane.xlu1 %1476 }
 0x9b3   :  { %v1481_v16 = vmul.f32 0.03125, %v1477_v14 }
 0x9b4   :  { %v1480_v18 = vpop.xlane.xlu0 %1479 }
 0x9b5   :  { %v1482_v19 = vmul.f32 0.03125, %v1480_v18  ;;  %v1493_v22 = vmul.f32 %v1481_v16, %v1481_v16  ;;  %v1497_v31 = vsub.f32 %v1473_v5, %v1481_v16 }
 0x9b6   :  { %v1487_v20 = vpop.xlane.xlu1 %1486 }
 0x9b7   :  { %v1491_v23 = vmul.f32 0.03125, %v1487_v20  ;;  %v1494_v25 = vmul.f32 %v1482_v19, %v1482_v19  ;;  %v1498_v33 = vsub.f32 %v1474_v8, %v1482_v19 }
 0x9b8   :  { %v1490_v24 = vpop.xlane.xlu0 %1489 }
 0x9b9   :  { %v1495_v27 = vsub.f32 %v1491_v23, %v1493_v22  ;;  %v1492_v28 = vmul.f32 0.03125, %v1490_v24 }
 0x9bb   :  { %v1499_v29 = vadd.f32 1e-05, %v1495_v27  ;;  %v1496_v30 = vsub.f32 %v1492_v28, %v1494_v25 }
 0x9bd   :  { %1845 = vrsqrt.f32 %v1499_v29  ;;  %v1500_v17 = vadd.f32 1e-05, %v1496_v30 }
 0x9bf   :  { %1847 = vrsqrt.f32 %v1500_v17 }
 0x9c7   :  { %v1846_v32 = vpop.eup %1845 }
 0x9c8   :  { %v1503_v34 = vmul.f32 %v1846_v32, %v1497_v31 }
 0x9c9   :  { %v1848_v35 = vpop.eup %1847 }
 0x9ca   :  { %v1504_v36 = vmul.f32 %v1848_v35, %v1498_v33  ;;  %v1505_v37 = vmul.f32 %v2501_v21, %v1503_v34 }
 0x9cc   :  { %v1506_v38 = vmul.f32 %v2501_v21, %v1504_v36  ;;  %v1507_v39 = vadd.f32 %v2504_v26, %v1505_v37 }
 0x9ce   :  { %v1508_v40 = vadd.f32 %v2504_v26, %v1506_v38  ;;  %1509 = vst.msk [vmem:[#allocation18] sm:$0xff] %vm176_vm1, %v1507_v39 }
 0x9d0   :  { %1510 = vst.msk [vmem:[#allocation18 + $0x8] sm:$0xff] %vm176_vm1, %v1508_v40 }
 0x9d1   :  { %2058 = shalt.err (!%p2055_p6)
}
 0x9d2   :  { %s2059_s21 = scalar_lea.hbm %s2555_s9, 256 }
 0x9d3   :  { %p2060_p7 = scmp.ne.s32.totalorder %s2555_s9, %s2059_s21  ;;  %p2063_p8 = scmp.lt.u32.totalorder %s2059_s21, %s2555_s9 }
 0x9d5   :  { %p2065_p9 = pnand %p2063_p8, %p2060_p7 }
 0x9d7   :  { %2068 = shalt.err (!%p2065_p9)
}
 0x9d8   :  { %1522 = dma.vmem_to_hbm [thread:$0]  %s1517_s17, 256, %s2555_s9, [#allocation5], %s2088_s7, %s2088_s7, %s2089_s27  }
 0x9d9   :  { %2079 = dma.done.wait [#allocation5], 256  }
 0x9da   :  { %2080 = vsyncadd [#allocation5], 4294967040 }
 0x9db   :  { %1526 = vsyncpa [#allocation4], 1 }
 0x9dc   :  { %1527 = vsyncpa [#allocation7], 1 }
 0x9dd   :  { %1528 = vsyncpa [#allocation10], 1 }
 0x9de   :  { %1529 = vsyncpa [#allocation13], 1 }
 0x9df   :  { %1530 = vsyncpa [#allocation16], 1 }
 0x9e0   :  { %1531 = vsyncpa [#allocation5], 1 }

</bundles_post_ra>
